<compile_context>
chip_gen: v7x
topology: tpu7x:2x2x1
jax: 0.10.0
libtpu: 0.0.40
codegen_flags: <defaults>
</compile_context>

<pallas_src>
import jax
import jax.numpy as jnp
from jax import lax
from jax.experimental import pallas as pl
from jax.experimental.pallas import tpu as pltpu

# On v6e / v7x at scale set this to jnp.bfloat16: the non-recurrent (batched)
# matmuls (embedding, hoisted gate precompute, beta projection) then ride the
# fast bf16 MXU path with f32 accumulation.  The recurrent h @ w_hh, the cell
# state and all elementwise/transcendental work always stay f32 (required on
# v5e, whose VPU/EUP have no bf16 path).
NONRECURRENT_MM_DTYPE = jnp.float32

BATCH_TILE = 8  # sublane-aligned batch rows processed per grid step


def retain_kernel(x_ref, w_emb_ref, b_emb_ref,
                  w_ih0_ref, w_hh0_ref, b0_ref,
                  w_ih1_ref, w_hh1_ref, b1_ref,
                  w_alpha_ref, b_alpha_ref,
                  w_beta_ref, b_beta_ref,
                  w_pred_ref, b_pred_ref,
                  out_ref,
                  emb_sc, gx_sc, h0_sc, h1_sc):
    T, TB, Din = x_ref.shape
    E = w_emb_ref.shape[1]
    H = w_hh0_ref.shape[0]
    G = 4 * H
    mm_dt = NONRECURRENT_MM_DTYPE

    def mm(a, b):   # non-recurrent (batched) matmul, f32 accumulation
        return jnp.dot(a.astype(mm_dt), b.astype(mm_dt),
                       preferred_element_type=jnp.float32)

    # ---- embedding Linear(Din -> E); Dropout == identity in eval mode ----
    x2d = x_ref[...].reshape(T * TB, Din)           # tile-aligned (TB == 8)
    emb2d = mm(x2d, w_emb_ref[...]) + b_emb_ref[...]
    emb_sc[...] = emb2d                             # pre-ReLU emb reused later

    # lane mask selecting the "g" gate range [2H, 3H) of the fused activation
    # (hoisted out of the loop: broadcast_in_dim is not CSE'd by JAX).
    lane = lax.broadcasted_iota(jnp.int32, (TB, G), 1)
    g_mask = (lane >= 2 * H) & (lane < 3 * H)

    def run_lstm(w_hh_ref, out_sc):
        """Serial recurrence; input-to-hidden gates precomputed in gx_sc."""
        w_hh = w_hh_ref[...]

        def step(t, carry):
            h, c = carry
            row = pl.multiple_of(t * TB, TB)
            gates = (jnp.dot(h, w_hh, preferred_element_type=jnp.float32)
                     + gx_sc[pl.ds(row, TB), :])              # (TB, 4H)
            # fused activations: two full-lane-width EUP passes + one select.
            sig = jax.nn.sigmoid(gates)
            th = jnp.tanh(gates)
            act = jnp.where(g_mask, th, sig)
            i_g = act[:, 0:H]
            f_g = act[:, H:2 * H]
            g_g = act[:, 2 * H:3 * H]
            o_g = act[:, 3 * H:4 * H]
            c = f_g * c + i_g * g_g
            h = o_g * jnp.tanh(c)
            out_sc[pl.ds(row, TB), :] = h
            return (h, c)

        zero = jnp.zeros((TB, H), jnp.float32)
        lax.fori_loop(0, T, step, (zero, zero), unroll=True)

    # ---- layer 0: gates_x = relu(emb) @ w_ih0 + b0 (one matmul for all T) ----
    gx_sc[...] = mm(jnp.maximum(emb2d, 0.0), w_ih0_ref[...]) + b0_ref[...]
    run_lstm(w_hh0_ref, h0_sc)

    # ---- layer 1: gates_x = h0 @ w_ih1 + b1 ----
    gx_sc[...] = mm(h0_sc[...], w_ih1_ref[...]) + b1_ref[...]
    run_lstm(w_hh1_ref, h1_sc)

    h1_2d = h1_sc[...]                              # (T*TB, H)

    # ---- alpha = softmax over time of Linear(H -> 1) ----
    alog = (jnp.dot(h1_2d, w_alpha_ref[...],
                    preferred_element_type=jnp.float32)
            + b_alpha_ref[...]).reshape(T, TB, 1)   # tile-aligned reshape
    m = jnp.max(alog, axis=0, keepdims=True)
    ea = jnp.exp(alog - m)
    alpha = ea * pl.reciprocal(jnp.sum(ea, axis=0, keepdims=True), approx=True)

    # ---- beta = tanh(Linear(H -> E)) ----
    beta2d = jnp.tanh(mm(h1_2d, w_beta_ref[...]) + b_beta_ref[...])  # (T*TB, E)

    # ---- context = sum_t alpha[t] * beta[t] * emb[t]  -> (TB, E) ----
    weighted = (beta2d * emb_sc[...]).reshape(T, TB, E)
    context = jnp.sum(alpha * weighted, axis=0)

    # ---- predictor Linear(E -> 2) ----
    out_ref[...] = (jnp.dot(context, w_pred_ref[...],
                            preferred_element_type=jnp.float32)
                    + b_pred_ref[...])


def retain_forward(x_btd, p):
    B, T, Din = x_btd.shape
    E = p['w_emb'].shape[1]
    H = p['w_hh0'].shape[0]
    TB = BATCH_TILE
    Bp = ((B + TB - 1) // TB) * TB                  # pad batch to sublane tile

    x_tbd = jnp.transpose(x_btd, (1, 0, 2)).astype(jnp.float32)   # (T, B, Din)
    if Bp != B:
        x_tbd = jnp.pad(x_tbd, ((0, 0), (0, Bp - B), (0, 0)))

    weights = [p['w_emb'], p['b_emb'],
               p['w_ih0'], p['w_hh0'], p['b0'],
               p['w_ih1'], p['w_hh1'], p['b1'],
               p['w_alpha'], p['b_alpha'],
               p['w_beta'], p['b_beta'],
               p['w_pred'], p['b_pred']]

    def replicated(a):
        nd = a.ndim
        return pl.BlockSpec(a.shape, lambda i, _nd=nd: (0,) * _nd)

    # NOTE: at scaled shapes re-derive scratch bytes (T*TB*(E+4H+2H)*4) against
    # the per-generation VMEM budget (64 MiB on v7x) and shrink TB / set
    # pltpu.CompilerParams(vmem_limit_bytes=...) accordingly.
    out_padded = pl.pallas_call(
        retain_kernel,
        out_shape=jax.ShapeDtypeStruct((Bp, 2), jnp.float32),
        grid_spec=pltpu.PrefetchScalarGridSpec(
            num_scalar_prefetch=0,
            grid=(Bp // TB,),
            in_specs=([pl.BlockSpec((T, TB, Din), lambda i: (0, i, 0))]
                      + [replicated(a) for a in weights]),
            out_specs=pl.BlockSpec((TB, 2), lambda i: (i, 0)),
            scratch_shapes=[pltpu.VMEM((T * TB, E), jnp.float32),       # emb
                            pltpu.VMEM((T * TB, 4 * H), jnp.float32),   # gates_x
                            pltpu.VMEM((T * TB, H), jnp.float32),       # h layer0
                            pltpu.VMEM((T * TB, H), jnp.float32)]),     # h layer1
        compiler_params=pltpu.CompilerParams(
            dimension_semantics=("parallel",)),     # batch tiles -> both TCs (v7x)
    )(x_tbd, *weights)
    return out_padded[:B]


def init_params(key, Din, E, H):
    ks = jax.random.split(key, 14)

    def u(k, shape, fan_in):
        bound = 1.0 / (fan_in ** 0.5)
        return jax.random.uniform(k, shape, jnp.float32, -bound, bound)

    return dict(
        w_emb=u(ks[0], (Din, E), Din), b_emb=u(ks[1], (1, E), Din),
        # LSTM: PyTorch stores b_ih and b_hh separately; their sum is used here.
        w_ih0=u(ks[2], (E, 4 * H), H), w_hh0=u(ks[3], (H, 4 * H), H),
        b0=u(ks[4], (1, 4 * H), H),
        w_ih1=u(ks[5], (H, 4 * H), H), w_hh1=u(ks[6], (H, 4 * H), H),
        b1=u(ks[7], (1, 4 * H), H),
        w_alpha=u(ks[8], (H, 1), H), b_alpha=u(ks[9], (1, 1), H),
        w_beta=u(ks[10], (H, E), H), b_beta=u(ks[11], (1, E), H),
        w_pred=u(ks[12], (E, 2), E), b_pred=u(ks[13], (1, 2), E),
    )


def retain_reference(x_btd, p):
    """Pure-JAX mirror of the PyTorch Retain forward (eval mode)."""
    B, T, Din = x_btd.shape
    H = p['w_hh0'].shape[0]
    emb = x_btd @ p['w_emb'] + p['b_emb'][0]        # (B, T, E)
    xin = jnp.maximum(emb, 0.0)

    def run_lstm(seq_btF, w_ih, w_hh, b):
        def step(carry, x_t):
            h, c = carry
            gates = x_t @ w_ih + h @ w_hh + b[0]
            i = jax.nn.sigmoid(gates[:, :H])
            f = jax.nn.sigmoid(gates[:, H:2 * H])
            g = jnp.tanh(gates[:, 2 * H:3 * H])
            o = jax.nn.sigmoid(gates[:, 3 * H:])
            c = f * c + i * g
            h = o * jnp.tanh(c)
            return (h, c), h
        h0 = jnp.zeros((B, H), jnp.float32)
        c0 = jnp.zeros((B, H), jnp.float32)
        _, hs = lax.scan(step, (h0, c0), jnp.transpose(seq_btF, (1, 0, 2)))
        return jnp.transpose(hs, (1, 0, 2))          # (B, T, H)

    h0 = run_lstm(xin, p['w_ih0'], p['w_hh0'], p['b0'])
    h1 = run_lstm(h0, p['w_ih1'], p['w_hh1'], p['b1'])
    alogits = (h1 @ p['w_alpha'])[..., 0] + p['b_alpha'][0, 0]     # (B, T)
    alpha = jax.nn.softmax(alogits, axis=-1)
    beta = jnp.tanh(h1 @ p['w_beta'] + p['b_beta'][0])
    context = jnp.einsum('bt,bte->be', alpha, beta * emb)
    return context @ p['w_pred'] + p['b_pred'][0]


if __name__ == "__main__":
    B, T, Din, E, H = 2, 8, 16, 32, 32
    key = jax.random.PRNGKey(0)
    kx, kp = jax.random.split(key)
    x = jax.random.normal(kx, (B, T, Din), jnp.float32)
    params = init_params(kp, Din, E, H)

    out = retain_forward(x, params)
    out = jax.block_until_ready(out)

    ref = retain_reference(x, params)
    assert out.shape == (B, 2)
    # tolerance covers the approx-reciprocal softmax denominator (EUP vrcp).
    assert jnp.allclose(out, ref, atol=2e-3, rtol=2e-3), (out, ref)
    print("KERNEL_OK")
</pallas_src>

<mosaic_0001>
module attributes {stable_mosaic.version = 11 : i64} {
  func.func @retain_kernel(%arg0: i32, %arg1: memref<8x8x16xf32, #tpu.memory_space<vmem>>, %arg2: memref<16x32xf32, #tpu.memory_space<vmem>>, %arg3: memref<1x32xf32, #tpu.memory_space<vmem>>, %arg4: memref<32x128xf32, #tpu.memory_space<vmem>>, %arg5: memref<32x128xf32, #tpu.memory_space<vmem>>, %arg6: memref<1x128xf32, #tpu.memory_space<vmem>>, %arg7: memref<32x128xf32, #tpu.memory_space<vmem>>, %arg8: memref<32x128xf32, #tpu.memory_space<vmem>>, %arg9: memref<1x128xf32, #tpu.memory_space<vmem>>, %arg10: memref<32x1xf32, #tpu.memory_space<vmem>>, %arg11: memref<1x1xf32, #tpu.memory_space<vmem>>, %arg12: memref<32x32xf32, #tpu.memory_space<vmem>>, %arg13: memref<1x32xf32, #tpu.memory_space<vmem>>, %arg14: memref<32x2xf32, #tpu.memory_space<vmem>>, %arg15: memref<1x2xf32, #tpu.memory_space<vmem>>, %arg16: memref<8x2xf32, #tpu.memory_space<vmem>>, %arg17: memref<64x32xf32, #tpu.memory_space<vmem>>, %arg18: memref<64x128xf32, #tpu.memory_space<vmem>>, %arg19: memref<64x32xf32, #tpu.memory_space<vmem>>, %arg20: memref<64x32xf32, #tpu.memory_space<vmem>>) attributes {dimension_semantics = [#tpu.dimension_semantics<parallel>], iteration_bounds = array<i64: 1>, scalar_prefetch = 0 : i64, scratch_operands = 4 : i64, tpu.core_type = #tpu.core_type<tc>, window_params = [{transform_indices = @transform_0, window_bounds = array<i64: 8, 8, 16>}, {pipeline_mode = #tpu.pipeline_mode<synchronous>, transform_indices = @transform_1, window_bounds = array<i64: 16, 32>}, {pipeline_mode = #tpu.pipeline_mode<synchronous>, transform_indices = @transform_2, window_bounds = array<i64: 1, 32>}, {pipeline_mode = #tpu.pipeline_mode<synchronous>, transform_indices = @transform_3, window_bounds = array<i64: 32, 128>}, {pipeline_mode = #tpu.pipeline_mode<synchronous>, transform_indices = @transform_4, window_bounds = array<i64: 32, 128>}, {pipeline_mode = #tpu.pipeline_mode<synchronous>, transform_indices = @transform_5, window_bounds = array<i64: 1, 128>}, {pipeline_mode = #tpu.pipeline_mode<synchronous>, transform_indices = @transform_6, window_bounds = array<i64: 32, 128>}, {pipeline_mode = #tpu.pipeline_mode<synchronous>, transform_indices = @transform_7, window_bounds = array<i64: 32, 128>}, {pipeline_mode = #tpu.pipeline_mode<synchronous>, transform_indices = @transform_8, window_bounds = array<i64: 1, 128>}, {pipeline_mode = #tpu.pipeline_mode<synchronous>, transform_indices = @transform_9, window_bounds = array<i64: 32, 1>}, {pipeline_mode = #tpu.pipeline_mode<synchronous>, transform_indices = @transform_10, window_bounds = array<i64: 1, 1>}, {pipeline_mode = #tpu.pipeline_mode<synchronous>, transform_indices = @transform_11, window_bounds = array<i64: 32, 32>}, {pipeline_mode = #tpu.pipeline_mode<synchronous>, transform_indices = @transform_12, window_bounds = array<i64: 1, 32>}, {pipeline_mode = #tpu.pipeline_mode<synchronous>, transform_indices = @transform_13, window_bounds = array<i64: 32, 2>}, {pipeline_mode = #tpu.pipeline_mode<synchronous>, transform_indices = @transform_14, window_bounds = array<i64: 1, 2>}, {transform_indices = @transform_15, window_bounds = array<i64: 8, 2>}]} {
    %c0 = arith.constant 0 : index
    %c0_0 = arith.constant 0 : index
    %c0_1 = arith.constant 0 : index
    %0 = vector.load %arg1[%c0, %c0_0, %c0_1] : memref<8x8x16xf32, #tpu.memory_space<vmem>>, vector<8x8x16xf32>
    %1 = vector.shape_cast %0 : vector<8x8x16xf32> to vector<64x16xf32>
    %c0_2 = arith.constant 0 : index
    %c0_3 = arith.constant 0 : index
    %2 = vector.load %arg2[%c0_2, %c0_3] : memref<16x32xf32, #tpu.memory_space<vmem>>, vector<16x32xf32>
    %cst = arith.constant dense<0.000000e+00> : vector<64x32xf32>
    %3 = tpu.matmul %1, %2, %cst {dimension_numbers = #tpu.dot_dimension_numbers<[1], [0], [0], [1], [0, 0, 1, 1], [], []>} : vector<64x16xf32>, vector<16x32xf32>, vector<64x32xf32> -> vector<64x32xf32>
    %c0_4 = arith.constant 0 : index
    %c0_5 = arith.constant 0 : index
    %4 = vector.load %arg3[%c0_4, %c0_5] : memref<1x32xf32, #tpu.memory_space<vmem>>, vector<1x32xf32>
    %5 = vector.broadcast %4 : vector<1x32xf32> to vector<64x32xf32>
    %6 = arith.addf %3, %5 : vector<64x32xf32>
    %c0_6 = arith.constant 0 : index
    %c0_7 = arith.constant 0 : index
    %7 = vector.load %arg17[%c0_6, %c0_7] : memref<64x32xf32, #tpu.memory_space<vmem>>, vector<64x32xf32>
    tpu.vector_store %arg17[%c0_6, %c0_7], %6 {strides = array<i32>} : memref<64x32xf32, #tpu.memory_space<vmem>>, vector<64x32xf32>,
    %8 = tpu.iota {dimensions = array<i32: 1>} : vector<8x128xi32>
    %c64_i32 = arith.constant 64 : i32
    %9 = vector.broadcast %c64_i32 : i32 to vector<8x128xi32>
    %10 = arith.cmpi sge, %8, %9 : vector<8x128xi32>
    %c96_i32 = arith.constant 96 : i32
    %11 = vector.broadcast %c96_i32 : i32 to vector<8x128xi32>
    %12 = arith.cmpi slt, %8, %11 : vector<8x128xi32>
    %13 = arith.andi %10, %12 : vector<8x128xi1>
    %cst_8 = arith.constant 0.000000e+00 : f32
    %14 = vector.broadcast %cst_8 : f32 to vector<64x32xf32>
    %15 = arith.maximumf %6, %14 : vector<64x32xf32>
    %c0_9 = arith.constant 0 : index
    %c0_10 = arith.constant 0 : index
    %16 = vector.load %arg4[%c0_9, %c0_10] : memref<32x128xf32, #tpu.memory_space<vmem>>, vector<32x128xf32>
    %cst_11 = arith.constant dense<0.000000e+00> : vector<64x128xf32>
    %17 = tpu.matmul %15, %16, %cst_11 {dimension_numbers = #tpu.dot_dimension_numbers<[1], [0], [0], [1], [0, 0, 1, 1], [], []>} : vector<64x32xf32>, vector<32x128xf32>, vector<64x128xf32> -> vector<64x128xf32>
    %c0_12 = arith.constant 0 : index
    %c0_13 = arith.constant 0 : index
    %18 = vector.load %arg6[%c0_12, %c0_13] : memref<1x128xf32, #tpu.memory_space<vmem>>, vector<1x128xf32>
    %19 = vector.broadcast %18 : vector<1x128xf32> to vector<64x128xf32>
    %20 = arith.addf %17, %19 : vector<64x128xf32>
    %c0_14 = arith.constant 0 : index
    %c0_15 = arith.constant 0 : index
    %21 = vector.load %arg18[%c0_14, %c0_15] : memref<64x128xf32, #tpu.memory_space<vmem>>, vector<64x128xf32>
    tpu.vector_store %arg18[%c0_14, %c0_15], %20 {strides = array<i32>} : memref<64x128xf32, #tpu.memory_space<vmem>>, vector<64x128xf32>,
    %c0_16 = arith.constant 0 : index
    %c0_17 = arith.constant 0 : index
    %22 = vector.load %arg5[%c0_16, %c0_17] : memref<32x128xf32, #tpu.memory_space<vmem>>, vector<32x128xf32>
    %cst_18 = arith.constant 0.000000e+00 : f32
    %23 = vector.broadcast %cst_18 : f32 to vector<8x32xf32>
    %c0_i32 = arith.constant 0 : i32
    %c8_i32 = arith.constant 8 : i32
    %24 = arith.muli %c0_i32, %c8_i32 : i32
    %25 = tpu.assume_multiple %24, 8 : i32
    %cst_19 = arith.constant dense<0.000000e+00> : vector<8x128xf32>
    %26 = tpu.matmul %23, %22, %cst_19 {dimension_numbers = #tpu.dot_dimension_numbers<[1], [0], [0], [1], [0, 0, 1, 1], [], []>} : vector<8x32xf32>, vector<32x128xf32>, vector<8x128xf32> -> vector<8x128xf32>
    %27 = arith.index_cast %25 : i32 to index
    %c0_20 = arith.constant 0 : index
    %28 = vector.load %arg18[%27, %c0_20] : memref<64x128xf32, #tpu.memory_space<vmem>>, vector<8x128xf32>
    %29 = arith.addf %26, %28 : vector<8x128xf32>
    %30 = arith.negf %29 : vector<8x128xf32>
    %31 = math.exp %30 : vector<8x128xf32>
    %cst_21 = arith.constant 1.000000e+00 : f32
    %32 = vector.broadcast %cst_21 : f32 to vector<8x128xf32>
    %33 = arith.addf %32, %31 : vector<8x128xf32>
    %34 = arith.divf %32, %33 : vector<8x128xf32>
    %35 = math.tanh %29 : vector<8x128xf32>
    %36 = arith.select %13, %35, %34 : vector<8x128xi1>, vector<8x128xf32>
    %37 = vector.extract_strided_slice %36 {offsets = [0, 0], sizes = [8, 32], strides = [1, 1]} : vector<8x128xf32> to vector<8x32xf32>
    %38 = vector.extract_strided_slice %36 {offsets = [0, 32], sizes = [8, 32], strides = [1, 1]} : vector<8x128xf32> to vector<8x32xf32>
    %39 = vector.extract_strided_slice %36 {offsets = [0, 64], sizes = [8, 32], strides = [1, 1]} : vector<8x128xf32> to vector<8x32xf32>
    %40 = vector.extract_strided_slice %36 {offsets = [0, 96], sizes = [8, 32], strides = [1, 1]} : vector<8x128xf32> to vector<8x32xf32>
    %41 = arith.mulf %38, %23 : vector<8x32xf32>
    %42 = arith.mulf %37, %39 : vector<8x32xf32>
    %43 = arith.addf %41, %42 : vector<8x32xf32>
    %44 = math.tanh %43 : vector<8x32xf32>
    %45 = arith.mulf %40, %44 : vector<8x32xf32>
    %46 = arith.index_cast %25 : i32 to index
    %c0_22 = arith.constant 0 : index
    %47 = vector.load %arg19[%46, %c0_22] : memref<64x32xf32, #tpu.memory_space<vmem>>, vector<8x32xf32>
    tpu.vector_store %arg19[%46, %c0_22], %45 {strides = array<i32>} : memref<64x32xf32, #tpu.memory_space<vmem>>, vector<8x32xf32>,
    %c1_i32 = arith.constant 1 : i32
    %c8_i32_23 = arith.constant 8 : i32
    %48 = arith.muli %c1_i32, %c8_i32_23 : i32
    %49 = tpu.assume_multiple %48, 8 : i32
    %cst_24 = arith.constant dense<0.000000e+00> : vector<8x128xf32>
    %50 = tpu.matmul %45, %22, %cst_24 {dimension_numbers = #tpu.dot_dimension_numbers<[1], [0], [0], [1], [0, 0, 1, 1], [], []>} : vector<8x32xf32>, vector<32x128xf32>, vector<8x128xf32> -> vector<8x128xf32>
    %51 = arith.index_cast %49 : i32 to index
    %c0_25 = arith.constant 0 : index
    %52 = vector.load %arg18[%51, %c0_25] : memref<64x128xf32, #tpu.memory_space<vmem>>, vector<8x128xf32>
    %53 = arith.addf %50, %52 : vector<8x128xf32>
    %54 = arith.negf %53 : vector<8x128xf32>
    %55 = math.exp %54 : vector<8x128xf32>
    %cst_26 = arith.constant 1.000000e+00 : f32
    %56 = vector.broadcast %cst_26 : f32 to vector<8x128xf32>
    %57 = arith.addf %56, %55 : vector<8x128xf32>
    %58 = arith.divf %56, %57 : vector<8x128xf32>
    %59 = math.tanh %53 : vector<8x128xf32>
    %60 = arith.select %13, %59, %58 : vector<8x128xi1>, vector<8x128xf32>
    %61 = vector.extract_strided_slice %60 {offsets = [0, 0], sizes = [8, 32], strides = [1, 1]} : vector<8x128xf32> to vector<8x32xf32>
    %62 = vector.extract_strided_slice %60 {offsets = [0, 32], sizes = [8, 32], strides = [1, 1]} : vector<8x128xf32> to vector<8x32xf32>
    %63 = vector.extract_strided_slice %60 {offsets = [0, 64], sizes = [8, 32], strides = [1, 1]} : vector<8x128xf32> to vector<8x32xf32>
    %64 = vector.extract_strided_slice %60 {offsets = [0, 96], sizes = [8, 32], strides = [1, 1]} : vector<8x128xf32> to vector<8x32xf32>
    %65 = arith.mulf %62, %43 : vector<8x32xf32>
    %66 = arith.mulf %61, %63 : vector<8x32xf32>
    %67 = arith.addf %65, %66 : vector<8x32xf32>
    %68 = math.tanh %67 : vector<8x32xf32>
    %69 = arith.mulf %64, %68 : vector<8x32xf32>
    %70 = arith.index_cast %49 : i32 to index
    %c0_27 = arith.constant 0 : index
    %71 = vector.load %arg19[%70, %c0_27] : memref<64x32xf32, #tpu.memory_space<vmem>>, vector<8x32xf32>
    tpu.vector_store %arg19[%70, %c0_27], %69 {strides = array<i32>} : memref<64x32xf32, #tpu.memory_space<vmem>>, vector<8x32xf32>,
    %c2_i32 = arith.constant 2 : i32
    %c8_i32_28 = arith.constant 8 : i32
    %72 = arith.muli %c2_i32, %c8_i32_28 : i32
    %73 = tpu.assume_multiple %72, 8 : i32
    %cst_29 = arith.constant dense<0.000000e+00> : vector<8x128xf32>
    %74 = tpu.matmul %69, %22, %cst_29 {dimension_numbers = #tpu.dot_dimension_numbers<[1], [0], [0], [1], [0, 0, 1, 1], [], []>} : vector<8x32xf32>, vector<32x128xf32>, vector<8x128xf32> -> vector<8x128xf32>
    %75 = arith.index_cast %73 : i32 to index
    %c0_30 = arith.constant 0 : index
    %76 = vector.load %arg18[%75, %c0_30] : memref<64x128xf32, #tpu.memory_space<vmem>>, vector<8x128xf32>
    %77 = arith.addf %74, %76 : vector<8x128xf32>
    %78 = arith.negf %77 : vector<8x128xf32>
    %79 = math.exp %78 : vector<8x128xf32>
    %cst_31 = arith.constant 1.000000e+00 : f32
    %80 = vector.broadcast %cst_31 : f32 to vector<8x128xf32>
    %81 = arith.addf %80, %79 : vector<8x128xf32>
    %82 = arith.divf %80, %81 : vector<8x128xf32>
    %83 = math.tanh %77 : vector<8x128xf32>
    %84 = arith.select %13, %83, %82 : vector<8x128xi1>, vector<8x128xf32>
    %85 = vector.extract_strided_slice %84 {offsets = [0, 0], sizes = [8, 32], strides = [1, 1]} : vector<8x128xf32> to vector<8x32xf32>
    %86 = vector.extract_strided_slice %84 {offsets = [0, 32], sizes = [8, 32], strides = [1, 1]} : vector<8x128xf32> to vector<8x32xf32>
    %87 = vector.extract_strided_slice %84 {offsets = [0, 64], sizes = [8, 32], strides = [1, 1]} : vector<8x128xf32> to vector<8x32xf32>
    %88 = vector.extract_strided_slice %84 {offsets = [0, 96], sizes = [8, 32], strides = [1, 1]} : vector<8x128xf32> to vector<8x32xf32>
    %89 = arith.mulf %86, %67 : vector<8x32xf32>
    %90 = arith.mulf %85, %87 : vector<8x32xf32>
    %91 = arith.addf %89, %90 : vector<8x32xf32>
    %92 = math.tanh %91 : vector<8x32xf32>
    %93 = arith.mulf %88, %92 : vector<8x32xf32>
    %94 = arith.index_cast %73 : i32 to index
    %c0_32 = arith.constant 0 : index
    %95 = vector.load %arg19[%94, %c0_32] : memref<64x32xf32, #tpu.memory_space<vmem>>, vector<8x32xf32>
    tpu.vector_store %arg19[%94, %c0_32], %93 {strides = array<i32>} : memref<64x32xf32, #tpu.memory_space<vmem>>, vector<8x32xf32>,
    %c3_i32 = arith.constant 3 : i32
    %c8_i32_33 = arith.constant 8 : i32
    %96 = arith.muli %c3_i32, %c8_i32_33 : i32
    %97 = tpu.assume_multiple %96, 8 : i32
    %cst_34 = arith.constant dense<0.000000e+00> : vector<8x128xf32>
    %98 = tpu.matmul %93, %22, %cst_34 {dimension_numbers = #tpu.dot_dimension_numbers<[1], [0], [0], [1], [0, 0, 1, 1], [], []>} : vector<8x32xf32>, vector<32x128xf32>, vector<8x128xf32> -> vector<8x128xf32>
    %99 = arith.index_cast %97 : i32 to index
    %c0_35 = arith.constant 0 : index
    %100 = vector.load %arg18[%99, %c0_35] : memref<64x128xf32, #tpu.memory_space<vmem>>, vector<8x128xf32>
    %101 = arith.addf %98, %100 : vector<8x128xf32>
    %102 = arith.negf %101 : vector<8x128xf32>
    %103 = math.exp %102 : vector<8x128xf32>
    %cst_36 = arith.constant 1.000000e+00 : f32
    %104 = vector.broadcast %cst_36 : f32 to vector<8x128xf32>
    %105 = arith.addf %104, %103 : vector<8x128xf32>
    %106 = arith.divf %104, %105 : vector<8x128xf32>
    %107 = math.tanh %101 : vector<8x128xf32>
    %108 = arith.select %13, %107, %106 : vector<8x128xi1>, vector<8x128xf32>
    %109 = vector.extract_strided_slice %108 {offsets = [0, 0], sizes = [8, 32], strides = [1, 1]} : vector<8x128xf32> to vector<8x32xf32>
    %110 = vector.extract_strided_slice %108 {offsets = [0, 32], sizes = [8, 32], strides = [1, 1]} : vector<8x128xf32> to vector<8x32xf32>
    %111 = vector.extract_strided_slice %108 {offsets = [0, 64], sizes = [8, 32], strides = [1, 1]} : vector<8x128xf32> to vector<8x32xf32>
    %112 = vector.extract_strided_slice %108 {offsets = [0, 96], sizes = [8, 32], strides = [1, 1]} : vector<8x128xf32> to vector<8x32xf32>
    %113 = arith.mulf %110, %91 : vector<8x32xf32>
    %114 = arith.mulf %109, %111 : vector<8x32xf32>
    %115 = arith.addf %113, %114 : vector<8x32xf32>
    %116 = math.tanh %115 : vector<8x32xf32>
    %117 = arith.mulf %112, %116 : vector<8x32xf32>
    %118 = arith.index_cast %97 : i32 to index
    %c0_37 = arith.constant 0 : index
    %119 = vector.load %arg19[%118, %c0_37] : memref<64x32xf32, #tpu.memory_space<vmem>>, vector<8x32xf32>
    tpu.vector_store %arg19[%118, %c0_37], %117 {strides = array<i32>} : memref<64x32xf32, #tpu.memory_space<vmem>>, vector<8x32xf32>,
    %c4_i32 = arith.constant 4 : i32
    %c8_i32_38 = arith.constant 8 : i32
    %120 = arith.muli %c4_i32, %c8_i32_38 : i32
    %121 = tpu.assume_multiple %120, 8 : i32
    %cst_39 = arith.constant dense<0.000000e+00> : vector<8x128xf32>
    %122 = tpu.matmul %117, %22, %cst_39 {dimension_numbers = #tpu.dot_dimension_numbers<[1], [0], [0], [1], [0, 0, 1, 1], [], []>} : vector<8x32xf32>, vector<32x128xf32>, vector<8x128xf32> -> vector<8x128xf32>
    %123 = arith.index_cast %121 : i32 to index
    %c0_40 = arith.constant 0 : index
    %124 = vector.load %arg18[%123, %c0_40] : memref<64x128xf32, #tpu.memory_space<vmem>>, vector<8x128xf32>
    %125 = arith.addf %122, %124 : vector<8x128xf32>
    %126 = arith.negf %125 : vector<8x128xf32>
    %127 = math.exp %126 : vector<8x128xf32>
    %cst_41 = arith.constant 1.000000e+00 : f32
    %128 = vector.broadcast %cst_41 : f32 to vector<8x128xf32>
    %129 = arith.addf %128, %127 : vector<8x128xf32>
    %130 = arith.divf %128, %129 : vector<8x128xf32>
    %131 = math.tanh %125 : vector<8x128xf32>
    %132 = arith.select %13, %131, %130 : vector<8x128xi1>, vector<8x128xf32>
    %133 = vector.extract_strided_slice %132 {offsets = [0, 0], sizes = [8, 32], strides = [1, 1]} : vector<8x128xf32> to vector<8x32xf32>
    %134 = vector.extract_strided_slice %132 {offsets = [0, 32], sizes = [8, 32], strides = [1, 1]} : vector<8x128xf32> to vector<8x32xf32>
    %135 = vector.extract_strided_slice %132 {offsets = [0, 64], sizes = [8, 32], strides = [1, 1]} : vector<8x128xf32> to vector<8x32xf32>
    %136 = vector.extract_strided_slice %132 {offsets = [0, 96], sizes = [8, 32], strides = [1, 1]} : vector<8x128xf32> to vector<8x32xf32>
    %137 = arith.mulf %134, %115 : vector<8x32xf32>
    %138 = arith.mulf %133, %135 : vector<8x32xf32>
    %139 = arith.addf %137, %138 : vector<8x32xf32>
    %140 = math.tanh %139 : vector<8x32xf32>
    %141 = arith.mulf %136, %140 : vector<8x32xf32>
    %142 = arith.index_cast %121 : i32 to index
    %c0_42 = arith.constant 0 : index
    %143 = vector.load %arg19[%142, %c0_42] : memref<64x32xf32, #tpu.memory_space<vmem>>, vector<8x32xf32>
    tpu.vector_store %arg19[%142, %c0_42], %141 {strides = array<i32>} : memref<64x32xf32, #tpu.memory_space<vmem>>, vector<8x32xf32>,
    %c5_i32 = arith.constant 5 : i32
    %c8_i32_43 = arith.constant 8 : i32
    %144 = arith.muli %c5_i32, %c8_i32_43 : i32
    %145 = tpu.assume_multiple %144, 8 : i32
    %cst_44 = arith.constant dense<0.000000e+00> : vector<8x128xf32>
    %146 = tpu.matmul %141, %22, %cst_44 {dimension_numbers = #tpu.dot_dimension_numbers<[1], [0], [0], [1], [0, 0, 1, 1], [], []>} : vector<8x32xf32>, vector<32x128xf32>, vector<8x128xf32> -> vector<8x128xf32>
    %147 = arith.index_cast %145 : i32 to index
    %c0_45 = arith.constant 0 : index
    %148 = vector.load %arg18[%147, %c0_45] : memref<64x128xf32, #tpu.memory_space<vmem>>, vector<8x128xf32>
    %149 = arith.addf %146, %148 : vector<8x128xf32>
    %150 = arith.negf %149 : vector<8x128xf32>
    %151 = math.exp %150 : vector<8x128xf32>
    %cst_46 = arith.constant 1.000000e+00 : f32
    %152 = vector.broadcast %cst_46 : f32 to vector<8x128xf32>
    %153 = arith.addf %152, %151 : vector<8x128xf32>
    %154 = arith.divf %152, %153 : vector<8x128xf32>
    %155 = math.tanh %149 : vector<8x128xf32>
    %156 = arith.select %13, %155, %154 : vector<8x128xi1>, vector<8x128xf32>
    %157 = vector.extract_strided_slice %156 {offsets = [0, 0], sizes = [8, 32], strides = [1, 1]} : vector<8x128xf32> to vector<8x32xf32>
    %158 = vector.extract_strided_slice %156 {offsets = [0, 32], sizes = [8, 32], strides = [1, 1]} : vector<8x128xf32> to vector<8x32xf32>
    %159 = vector.extract_strided_slice %156 {offsets = [0, 64], sizes = [8, 32], strides = [1, 1]} : vector<8x128xf32> to vector<8x32xf32>
    %160 = vector.extract_strided_slice %156 {offsets = [0, 96], sizes = [8, 32], strides = [1, 1]} : vector<8x128xf32> to vector<8x32xf32>
    %161 = arith.mulf %158, %139 : vector<8x32xf32>
    %162 = arith.mulf %157, %159 : vector<8x32xf32>
    %163 = arith.addf %161, %162 : vector<8x32xf32>
    %164 = math.tanh %163 : vector<8x32xf32>
    %165 = arith.mulf %160, %164 : vector<8x32xf32>
    %166 = arith.index_cast %145 : i32 to index
    %c0_47 = arith.constant 0 : index
    %167 = vector.load %arg19[%166, %c0_47] : memref<64x32xf32, #tpu.memory_space<vmem>>, vector<8x32xf32>
    tpu.vector_store %arg19[%166, %c0_47], %165 {strides = array<i32>} : memref<64x32xf32, #tpu.memory_space<vmem>>, vector<8x32xf32>,
    %c6_i32 = arith.constant 6 : i32
    %c8_i32_48 = arith.constant 8 : i32
    %168 = arith.muli %c6_i32, %c8_i32_48 : i32
    %169 = tpu.assume_multiple %168, 8 : i32
    %cst_49 = arith.constant dense<0.000000e+00> : vector<8x128xf32>
    %170 = tpu.matmul %165, %22, %cst_49 {dimension_numbers = #tpu.dot_dimension_numbers<[1], [0], [0], [1], [0, 0, 1, 1], [], []>} : vector<8x32xf32>, vector<32x128xf32>, vector<8x128xf32> -> vector<8x128xf32>
    %171 = arith.index_cast %169 : i32 to index
    %c0_50 = arith.constant 0 : index
    %172 = vector.load %arg18[%171, %c0_50] : memref<64x128xf32, #tpu.memory_space<vmem>>, vector<8x128xf32>
    %173 = arith.addf %170, %172 : vector<8x128xf32>
    %174 = arith.negf %173 : vector<8x128xf32>
    %175 = math.exp %174 : vector<8x128xf32>
    %cst_51 = arith.constant 1.000000e+00 : f32
    %176 = vector.broadcast %cst_51 : f32 to vector<8x128xf32>
    %177 = arith.addf %176, %175 : vector<8x128xf32>
    %178 = arith.divf %176, %177 : vector<8x128xf32>
    %179 = math.tanh %173 : vector<8x128xf32>
    %180 = arith.select %13, %179, %178 : vector<8x128xi1>, vector<8x128xf32>
    %181 = vector.extract_strided_slice %180 {offsets = [0, 0], sizes = [8, 32], strides = [1, 1]} : vector<8x128xf32> to vector<8x32xf32>
    %182 = vector.extract_strided_slice %180 {offsets = [0, 32], sizes = [8, 32], strides = [1, 1]} : vector<8x128xf32> to vector<8x32xf32>
    %183 = vector.extract_strided_slice %180 {offsets = [0, 64], sizes = [8, 32], strides = [1, 1]} : vector<8x128xf32> to vector<8x32xf32>
    %184 = vector.extract_strided_slice %180 {offsets = [0, 96], sizes = [8, 32], strides = [1, 1]} : vector<8x128xf32> to vector<8x32xf32>
    %185 = arith.mulf %182, %163 : vector<8x32xf32>
    %186 = arith.mulf %181, %183 : vector<8x32xf32>
    %187 = arith.addf %185, %186 : vector<8x32xf32>
    %188 = math.tanh %187 : vector<8x32xf32>
    %189 = arith.mulf %184, %188 : vector<8x32xf32>
    %190 = arith.index_cast %169 : i32 to index
    %c0_52 = arith.constant 0 : index
    %191 = vector.load %arg19[%190, %c0_52] : memref<64x32xf32, #tpu.memory_space<vmem>>, vector<8x32xf32>
    tpu.vector_store %arg19[%190, %c0_52], %189 {strides = array<i32>} : memref<64x32xf32, #tpu.memory_space<vmem>>, vector<8x32xf32>,
    %c7_i32 = arith.constant 7 : i32
    %c8_i32_53 = arith.constant 8 : i32
    %192 = arith.muli %c7_i32, %c8_i32_53 : i32
    %193 = tpu.assume_multiple %192, 8 : i32
    %cst_54 = arith.constant dense<0.000000e+00> : vector<8x128xf32>
    %194 = tpu.matmul %189, %22, %cst_54 {dimension_numbers = #tpu.dot_dimension_numbers<[1], [0], [0], [1], [0, 0, 1, 1], [], []>} : vector<8x32xf32>, vector<32x128xf32>, vector<8x128xf32> -> vector<8x128xf32>
    %195 = arith.index_cast %193 : i32 to index
    %c0_55 = arith.constant 0 : index
    %196 = vector.load %arg18[%195, %c0_55] : memref<64x128xf32, #tpu.memory_space<vmem>>, vector<8x128xf32>
    %197 = arith.addf %194, %196 : vector<8x128xf32>
    %198 = arith.negf %197 : vector<8x128xf32>
    %199 = math.exp %198 : vector<8x128xf32>
    %cst_56 = arith.constant 1.000000e+00 : f32
    %200 = vector.broadcast %cst_56 : f32 to vector<8x128xf32>
    %201 = arith.addf %200, %199 : vector<8x128xf32>
    %202 = arith.divf %200, %201 : vector<8x128xf32>
    %203 = math.tanh %197 : vector<8x128xf32>
    %204 = arith.select %13, %203, %202 : vector<8x128xi1>, vector<8x128xf32>
    %205 = vector.extract_strided_slice %204 {offsets = [0, 0], sizes = [8, 32], strides = [1, 1]} : vector<8x128xf32> to vector<8x32xf32>
    %206 = vector.extract_strided_slice %204 {offsets = [0, 32], sizes = [8, 32], strides = [1, 1]} : vector<8x128xf32> to vector<8x32xf32>
    %207 = vector.extract_strided_slice %204 {offsets = [0, 64], sizes = [8, 32], strides = [1, 1]} : vector<8x128xf32> to vector<8x32xf32>
    %208 = vector.extract_strided_slice %204 {offsets = [0, 96], sizes = [8, 32], strides = [1, 1]} : vector<8x128xf32> to vector<8x32xf32>
    %209 = arith.mulf %206, %187 : vector<8x32xf32>
    %210 = arith.mulf %205, %207 : vector<8x32xf32>
    %211 = arith.addf %209, %210 : vector<8x32xf32>
    %212 = math.tanh %211 : vector<8x32xf32>
    %213 = arith.mulf %208, %212 : vector<8x32xf32>
    %214 = arith.index_cast %193 : i32 to index
    %c0_57 = arith.constant 0 : index
    %215 = vector.load %arg19[%214, %c0_57] : memref<64x32xf32, #tpu.memory_space<vmem>>, vector<8x32xf32>
    tpu.vector_store %arg19[%214, %c0_57], %213 {strides = array<i32>} : memref<64x32xf32, #tpu.memory_space<vmem>>, vector<8x32xf32>,
    %c8_i32_58 = arith.constant 8 : i32
    %c0_59 = arith.constant 0 : index
    %c0_60 = arith.constant 0 : index
    %216 = vector.load %arg19[%c0_59, %c0_60] : memref<64x32xf32, #tpu.memory_space<vmem>>, vector<64x32xf32>
    %c0_61 = arith.constant 0 : index
    %c0_62 = arith.constant 0 : index
    %217 = vector.load %arg7[%c0_61, %c0_62] : memref<32x128xf32, #tpu.memory_space<vmem>>, vector<32x128xf32>
    %cst_63 = arith.constant dense<0.000000e+00> : vector<64x128xf32>
    %218 = tpu.matmul %216, %217, %cst_63 {dimension_numbers = #tpu.dot_dimension_numbers<[1], [0], [0], [1], [0, 0, 1, 1], [], []>} : vector<64x32xf32>, vector<32x128xf32>, vector<64x128xf32> -> vector<64x128xf32>
    %c0_64 = arith.constant 0 : index
    %c0_65 = arith.constant 0 : index
    %219 = vector.load %arg9[%c0_64, %c0_65] : memref<1x128xf32, #tpu.memory_space<vmem>>, vector<1x128xf32>
    %220 = vector.broadcast %219 : vector<1x128xf32> to vector<64x128xf32>
    %221 = arith.addf %218, %220 : vector<64x128xf32>
    %c0_66 = arith.constant 0 : index
    %c0_67 = arith.constant 0 : index
    %222 = vector.load %arg18[%c0_66, %c0_67] : memref<64x128xf32, #tpu.memory_space<vmem>>, vector<64x128xf32>
    tpu.vector_store %arg18[%c0_66, %c0_67], %221 {strides = array<i32>} : memref<64x128xf32, #tpu.memory_space<vmem>>, vector<64x128xf32>,
    %c0_68 = arith.constant 0 : index
    %c0_69 = arith.constant 0 : index
    %223 = vector.load %arg8[%c0_68, %c0_69] : memref<32x128xf32, #tpu.memory_space<vmem>>, vector<32x128xf32>
    %cst_70 = arith.constant 0.000000e+00 : f32
    %224 = vector.broadcast %cst_70 : f32 to vector<8x32xf32>
    %c0_i32_71 = arith.constant 0 : i32
    %c8_i32_72 = arith.constant 8 : i32
    %225 = arith.muli %c0_i32_71, %c8_i32_72 : i32
    %226 = tpu.assume_multiple %225, 8 : i32
    %cst_73 = arith.constant dense<0.000000e+00> : vector<8x128xf32>
    %227 = tpu.matmul %224, %223, %cst_73 {dimension_numbers = #tpu.dot_dimension_numbers<[1], [0], [0], [1], [0, 0, 1, 1], [], []>} : vector<8x32xf32>, vector<32x128xf32>, vector<8x128xf32> -> vector<8x128xf32>
    %228 = arith.index_cast %226 : i32 to index
    %c0_74 = arith.constant 0 : index
    %229 = vector.load %arg18[%228, %c0_74] : memref<64x128xf32, #tpu.memory_space<vmem>>, vector<8x128xf32>
    %230 = arith.addf %227, %229 : vector<8x128xf32>
    %231 = arith.negf %230 : vector<8x128xf32>
    %232 = math.exp %231 : vector<8x128xf32>
    %cst_75 = arith.constant 1.000000e+00 : f32
    %233 = vector.broadcast %cst_75 : f32 to vector<8x128xf32>
    %234 = arith.addf %233, %232 : vector<8x128xf32>
    %235 = arith.divf %233, %234 : vector<8x128xf32>
    %236 = math.tanh %230 : vector<8x128xf32>
    %237 = arith.select %13, %236, %235 : vector<8x128xi1>, vector<8x128xf32>
    %238 = vector.extract_strided_slice %237 {offsets = [0, 0], sizes = [8, 32], strides = [1, 1]} : vector<8x128xf32> to vector<8x32xf32>
    %239 = vector.extract_strided_slice %237 {offsets = [0, 32], sizes = [8, 32], strides = [1, 1]} : vector<8x128xf32> to vector<8x32xf32>
    %240 = vector.extract_strided_slice %237 {offsets = [0, 64], sizes = [8, 32], strides = [1, 1]} : vector<8x128xf32> to vector<8x32xf32>
    %241 = vector.extract_strided_slice %237 {offsets = [0, 96], sizes = [8, 32], strides = [1, 1]} : vector<8x128xf32> to vector<8x32xf32>
    %242 = arith.mulf %239, %224 : vector<8x32xf32>
    %243 = arith.mulf %238, %240 : vector<8x32xf32>
    %244 = arith.addf %242, %243 : vector<8x32xf32>
    %245 = math.tanh %244 : vector<8x32xf32>
    %246 = arith.mulf %241, %245 : vector<8x32xf32>
    %247 = arith.index_cast %226 : i32 to index
    %c0_76 = arith.constant 0 : index
    %248 = vector.load %arg20[%247, %c0_76] : memref<64x32xf32, #tpu.memory_space<vmem>>, vector<8x32xf32>
    tpu.vector_store %arg20[%247, %c0_76], %246 {strides = array<i32>} : memref<64x32xf32, #tpu.memory_space<vmem>>, vector<8x32xf32>,
    %c1_i32_77 = arith.constant 1 : i32
    %c8_i32_78 = arith.constant 8 : i32
    %249 = arith.muli %c1_i32_77, %c8_i32_78 : i32
    %250 = tpu.assume_multiple %249, 8 : i32
    %cst_79 = arith.constant dense<0.000000e+00> : vector<8x128xf32>
    %251 = tpu.matmul %246, %223, %cst_79 {dimension_numbers = #tpu.dot_dimension_numbers<[1], [0], [0], [1], [0, 0, 1, 1], [], []>} : vector<8x32xf32>, vector<32x128xf32>, vector<8x128xf32> -> vector<8x128xf32>
    %252 = arith.index_cast %250 : i32 to index
    %c0_80 = arith.constant 0 : index
    %253 = vector.load %arg18[%252, %c0_80] : memref<64x128xf32, #tpu.memory_space<vmem>>, vector<8x128xf32>
    %254 = arith.addf %251, %253 : vector<8x128xf32>
    %255 = arith.negf %254 : vector<8x128xf32>
    %256 = math.exp %255 : vector<8x128xf32>
    %cst_81 = arith.constant 1.000000e+00 : f32
    %257 = vector.broadcast %cst_81 : f32 to vector<8x128xf32>
    %258 = arith.addf %257, %256 : vector<8x128xf32>
    %259 = arith.divf %257, %258 : vector<8x128xf32>
    %260 = math.tanh %254 : vector<8x128xf32>
    %261 = arith.select %13, %260, %259 : vector<8x128xi1>, vector<8x128xf32>
    %262 = vector.extract_strided_slice %261 {offsets = [0, 0], sizes = [8, 32], strides = [1, 1]} : vector<8x128xf32> to vector<8x32xf32>
    %263 = vector.extract_strided_slice %261 {offsets = [0, 32], sizes = [8, 32], strides = [1, 1]} : vector<8x128xf32> to vector<8x32xf32>
    %264 = vector.extract_strided_slice %261 {offsets = [0, 64], sizes = [8, 32], strides = [1, 1]} : vector<8x128xf32> to vector<8x32xf32>
    %265 = vector.extract_strided_slice %261 {offsets = [0, 96], sizes = [8, 32], strides = [1, 1]} : vector<8x128xf32> to vector<8x32xf32>
    %266 = arith.mulf %263, %244 : vector<8x32xf32>
    %267 = arith.mulf %262, %264 : vector<8x32xf32>
    %268 = arith.addf %266, %267 : vector<8x32xf32>
    %269 = math.tanh %268 : vector<8x32xf32>
    %270 = arith.mulf %265, %269 : vector<8x32xf32>
    %271 = arith.index_cast %250 : i32 to index
    %c0_82 = arith.constant 0 : index
    %272 = vector.load %arg20[%271, %c0_82] : memref<64x32xf32, #tpu.memory_space<vmem>>, vector<8x32xf32>
    tpu.vector_store %arg20[%271, %c0_82], %270 {strides = array<i32>} : memref<64x32xf32, #tpu.memory_space<vmem>>, vector<8x32xf32>,
    %c2_i32_83 = arith.constant 2 : i32
    %c8_i32_84 = arith.constant 8 : i32
    %273 = arith.muli %c2_i32_83, %c8_i32_84 : i32
    %274 = tpu.assume_multiple %273, 8 : i32
    %cst_85 = arith.constant dense<0.000000e+00> : vector<8x128xf32>
    %275 = tpu.matmul %270, %223, %cst_85 {dimension_numbers = #tpu.dot_dimension_numbers<[1], [0], [0], [1], [0, 0, 1, 1], [], []>} : vector<8x32xf32>, vector<32x128xf32>, vector<8x128xf32> -> vector<8x128xf32>
    %276 = arith.index_cast %274 : i32 to index
    %c0_86 = arith.constant 0 : index
    %277 = vector.load %arg18[%276, %c0_86] : memref<64x128xf32, #tpu.memory_space<vmem>>, vector<8x128xf32>
    %278 = arith.addf %275, %277 : vector<8x128xf32>
    %279 = arith.negf %278 : vector<8x128xf32>
    %280 = math.exp %279 : vector<8x128xf32>
    %cst_87 = arith.constant 1.000000e+00 : f32
    %281 = vector.broadcast %cst_87 : f32 to vector<8x128xf32>
    %282 = arith.addf %281, %280 : vector<8x128xf32>
    %283 = arith.divf %281, %282 : vector<8x128xf32>
    %284 = math.tanh %278 : vector<8x128xf32>
    %285 = arith.select %13, %284, %283 : vector<8x128xi1>, vector<8x128xf32>
    %286 = vector.extract_strided_slice %285 {offsets = [0, 0], sizes = [8, 32], strides = [1, 1]} : vector<8x128xf32> to vector<8x32xf32>
    %287 = vector.extract_strided_slice %285 {offsets = [0, 32], sizes = [8, 32], strides = [1, 1]} : vector<8x128xf32> to vector<8x32xf32>
    %288 = vector.extract_strided_slice %285 {offsets = [0, 64], sizes = [8, 32], strides = [1, 1]} : vector<8x128xf32> to vector<8x32xf32>
    %289 = vector.extract_strided_slice %285 {offsets = [0, 96], sizes = [8, 32], strides = [1, 1]} : vector<8x128xf32> to vector<8x32xf32>
    %290 = arith.mulf %287, %268 : vector<8x32xf32>
    %291 = arith.mulf %286, %288 : vector<8x32xf32>
    %292 = arith.addf %290, %291 : vector<8x32xf32>
    %293 = math.tanh %292 : vector<8x32xf32>
    %294 = arith.mulf %289, %293 : vector<8x32xf32>
    %295 = arith.index_cast %274 : i32 to index
    %c0_88 = arith.constant 0 : index
    %296 = vector.load %arg20[%295, %c0_88] : memref<64x32xf32, #tpu.memory_space<vmem>>, vector<8x32xf32>
    tpu.vector_store %arg20[%295, %c0_88], %294 {strides = array<i32>} : memref<64x32xf32, #tpu.memory_space<vmem>>, vector<8x32xf32>,
    %c3_i32_89 = arith.constant 3 : i32
    %c8_i32_90 = arith.constant 8 : i32
    %297 = arith.muli %c3_i32_89, %c8_i32_90 : i32
    %298 = tpu.assume_multiple %297, 8 : i32
    %cst_91 = arith.constant dense<0.000000e+00> : vector<8x128xf32>
    %299 = tpu.matmul %294, %223, %cst_91 {dimension_numbers = #tpu.dot_dimension_numbers<[1], [0], [0], [1], [0, 0, 1, 1], [], []>} : vector<8x32xf32>, vector<32x128xf32>, vector<8x128xf32> -> vector<8x128xf32>
    %300 = arith.index_cast %298 : i32 to index
    %c0_92 = arith.constant 0 : index
    %301 = vector.load %arg18[%300, %c0_92] : memref<64x128xf32, #tpu.memory_space<vmem>>, vector<8x128xf32>
    %302 = arith.addf %299, %301 : vector<8x128xf32>
    %303 = arith.negf %302 : vector<8x128xf32>
    %304 = math.exp %303 : vector<8x128xf32>
    %cst_93 = arith.constant 1.000000e+00 : f32
    %305 = vector.broadcast %cst_93 : f32 to vector<8x128xf32>
    %306 = arith.addf %305, %304 : vector<8x128xf32>
    %307 = arith.divf %305, %306 : vector<8x128xf32>
    %308 = math.tanh %302 : vector<8x128xf32>
    %309 = arith.select %13, %308, %307 : vector<8x128xi1>, vector<8x128xf32>
    %310 = vector.extract_strided_slice %309 {offsets = [0, 0], sizes = [8, 32], strides = [1, 1]} : vector<8x128xf32> to vector<8x32xf32>
    %311 = vector.extract_strided_slice %309 {offsets = [0, 32], sizes = [8, 32], strides = [1, 1]} : vector<8x128xf32> to vector<8x32xf32>
    %312 = vector.extract_strided_slice %309 {offsets = [0, 64], sizes = [8, 32], strides = [1, 1]} : vector<8x128xf32> to vector<8x32xf32>
    %313 = vector.extract_strided_slice %309 {offsets = [0, 96], sizes = [8, 32], strides = [1, 1]} : vector<8x128xf32> to vector<8x32xf32>
    %314 = arith.mulf %311, %292 : vector<8x32xf32>
    %315 = arith.mulf %310, %312 : vector<8x32xf32>
    %316 = arith.addf %314, %315 : vector<8x32xf32>
    %317 = math.tanh %316 : vector<8x32xf32>
    %318 = arith.mulf %313, %317 : vector<8x32xf32>
    %319 = arith.index_cast %298 : i32 to index
    %c0_94 = arith.constant 0 : index
    %320 = vector.load %arg20[%319, %c0_94] : memref<64x32xf32, #tpu.memory_space<vmem>>, vector<8x32xf32>
    tpu.vector_store %arg20[%319, %c0_94], %318 {strides = array<i32>} : memref<64x32xf32, #tpu.memory_space<vmem>>, vector<8x32xf32>,
    %c4_i32_95 = arith.constant 4 : i32
    %c8_i32_96 = arith.constant 8 : i32
    %321 = arith.muli %c4_i32_95, %c8_i32_96 : i32
    %322 = tpu.assume_multiple %321, 8 : i32
    %cst_97 = arith.constant dense<0.000000e+00> : vector<8x128xf32>
    %323 = tpu.matmul %318, %223, %cst_97 {dimension_numbers = #tpu.dot_dimension_numbers<[1], [0], [0], [1], [0, 0, 1, 1], [], []>} : vector<8x32xf32>, vector<32x128xf32>, vector<8x128xf32> -> vector<8x128xf32>
    %324 = arith.index_cast %322 : i32 to index
    %c0_98 = arith.constant 0 : index
    %325 = vector.load %arg18[%324, %c0_98] : memref<64x128xf32, #tpu.memory_space<vmem>>, vector<8x128xf32>
    %326 = arith.addf %323, %325 : vector<8x128xf32>
    %327 = arith.negf %326 : vector<8x128xf32>
    %328 = math.exp %327 : vector<8x128xf32>
    %cst_99 = arith.constant 1.000000e+00 : f32
    %329 = vector.broadcast %cst_99 : f32 to vector<8x128xf32>
    %330 = arith.addf %329, %328 : vector<8x128xf32>
    %331 = arith.divf %329, %330 : vector<8x128xf32>
    %332 = math.tanh %326 : vector<8x128xf32>
    %333 = arith.select %13, %332, %331 : vector<8x128xi1>, vector<8x128xf32>
    %334 = vector.extract_strided_slice %333 {offsets = [0, 0], sizes = [8, 32], strides = [1, 1]} : vector<8x128xf32> to vector<8x32xf32>
    %335 = vector.extract_strided_slice %333 {offsets = [0, 32], sizes = [8, 32], strides = [1, 1]} : vector<8x128xf32> to vector<8x32xf32>
    %336 = vector.extract_strided_slice %333 {offsets = [0, 64], sizes = [8, 32], strides = [1, 1]} : vector<8x128xf32> to vector<8x32xf32>
    %337 = vector.extract_strided_slice %333 {offsets = [0, 96], sizes = [8, 32], strides = [1, 1]} : vector<8x128xf32> to vector<8x32xf32>
    %338 = arith.mulf %335, %316 : vector<8x32xf32>
    %339 = arith.mulf %334, %336 : vector<8x32xf32>
    %340 = arith.addf %338, %339 : vector<8x32xf32>
    %341 = math.tanh %340 : vector<8x32xf32>
    %342 = arith.mulf %337, %341 : vector<8x32xf32>
    %343 = arith.index_cast %322 : i32 to index
    %c0_100 = arith.constant 0 : index
    %344 = vector.load %arg20[%343, %c0_100] : memref<64x32xf32, #tpu.memory_space<vmem>>, vector<8x32xf32>
    tpu.vector_store %arg20[%343, %c0_100], %342 {strides = array<i32>} : memref<64x32xf32, #tpu.memory_space<vmem>>, vector<8x32xf32>,
    %c5_i32_101 = arith.constant 5 : i32
    %c8_i32_102 = arith.constant 8 : i32
    %345 = arith.muli %c5_i32_101, %c8_i32_102 : i32
    %346 = tpu.assume_multiple %345, 8 : i32
    %cst_103 = arith.constant dense<0.000000e+00> : vector<8x128xf32>
    %347 = tpu.matmul %342, %223, %cst_103 {dimension_numbers = #tpu.dot_dimension_numbers<[1], [0], [0], [1], [0, 0, 1, 1], [], []>} : vector<8x32xf32>, vector<32x128xf32>, vector<8x128xf32> -> vector<8x128xf32>
    %348 = arith.index_cast %346 : i32 to index
    %c0_104 = arith.constant 0 : index
    %349 = vector.load %arg18[%348, %c0_104] : memref<64x128xf32, #tpu.memory_space<vmem>>, vector<8x128xf32>
    %350 = arith.addf %347, %349 : vector<8x128xf32>
    %351 = arith.negf %350 : vector<8x128xf32>
    %352 = math.exp %351 : vector<8x128xf32>
    %cst_105 = arith.constant 1.000000e+00 : f32
    %353 = vector.broadcast %cst_105 : f32 to vector<8x128xf32>
    %354 = arith.addf %353, %352 : vector<8x128xf32>
    %355 = arith.divf %353, %354 : vector<8x128xf32>
    %356 = math.tanh %350 : vector<8x128xf32>
    %357 = arith.select %13, %356, %355 : vector<8x128xi1>, vector<8x128xf32>
    %358 = vector.extract_strided_slice %357 {offsets = [0, 0], sizes = [8, 32], strides = [1, 1]} : vector<8x128xf32> to vector<8x32xf32>
    %359 = vector.extract_strided_slice %357 {offsets = [0, 32], sizes = [8, 32], strides = [1, 1]} : vector<8x128xf32> to vector<8x32xf32>
    %360 = vector.extract_strided_slice %357 {offsets = [0, 64], sizes = [8, 32], strides = [1, 1]} : vector<8x128xf32> to vector<8x32xf32>
    %361 = vector.extract_strided_slice %357 {offsets = [0, 96], sizes = [8, 32], strides = [1, 1]} : vector<8x128xf32> to vector<8x32xf32>
    %362 = arith.mulf %359, %340 : vector<8x32xf32>
    %363 = arith.mulf %358, %360 : vector<8x32xf32>
    %364 = arith.addf %362, %363 : vector<8x32xf32>
    %365 = math.tanh %364 : vector<8x32xf32>
    %366 = arith.mulf %361, %365 : vector<8x32xf32>
    %367 = arith.index_cast %346 : i32 to index
    %c0_106 = arith.constant 0 : index
    %368 = vector.load %arg20[%367, %c0_106] : memref<64x32xf32, #tpu.memory_space<vmem>>, vector<8x32xf32>
    tpu.vector_store %arg20[%367, %c0_106], %366 {strides = array<i32>} : memref<64x32xf32, #tpu.memory_space<vmem>>, vector<8x32xf32>,
    %c6_i32_107 = arith.constant 6 : i32
    %c8_i32_108 = arith.constant 8 : i32
    %369 = arith.muli %c6_i32_107, %c8_i32_108 : i32
    %370 = tpu.assume_multiple %369, 8 : i32
    %cst_109 = arith.constant dense<0.000000e+00> : vector<8x128xf32>
    %371 = tpu.matmul %366, %223, %cst_109 {dimension_numbers = #tpu.dot_dimension_numbers<[1], [0], [0], [1], [0, 0, 1, 1], [], []>} : vector<8x32xf32>, vector<32x128xf32>, vector<8x128xf32> -> vector<8x128xf32>
    %372 = arith.index_cast %370 : i32 to index
    %c0_110 = arith.constant 0 : index
    %373 = vector.load %arg18[%372, %c0_110] : memref<64x128xf32, #tpu.memory_space<vmem>>, vector<8x128xf32>
    %374 = arith.addf %371, %373 : vector<8x128xf32>
    %375 = arith.negf %374 : vector<8x128xf32>
    %376 = math.exp %375 : vector<8x128xf32>
    %cst_111 = arith.constant 1.000000e+00 : f32
    %377 = vector.broadcast %cst_111 : f32 to vector<8x128xf32>
    %378 = arith.addf %377, %376 : vector<8x128xf32>
    %379 = arith.divf %377, %378 : vector<8x128xf32>
    %380 = math.tanh %374 : vector<8x128xf32>
    %381 = arith.select %13, %380, %379 : vector<8x128xi1>, vector<8x128xf32>
    %382 = vector.extract_strided_slice %381 {offsets = [0, 0], sizes = [8, 32], strides = [1, 1]} : vector<8x128xf32> to vector<8x32xf32>
    %383 = vector.extract_strided_slice %381 {offsets = [0, 32], sizes = [8, 32], strides = [1, 1]} : vector<8x128xf32> to vector<8x32xf32>
    %384 = vector.extract_strided_slice %381 {offsets = [0, 64], sizes = [8, 32], strides = [1, 1]} : vector<8x128xf32> to vector<8x32xf32>
    %385 = vector.extract_strided_slice %381 {offsets = [0, 96], sizes = [8, 32], strides = [1, 1]} : vector<8x128xf32> to vector<8x32xf32>
    %386 = arith.mulf %383, %364 : vector<8x32xf32>
    %387 = arith.mulf %382, %384 : vector<8x32xf32>
    %388 = arith.addf %386, %387 : vector<8x32xf32>
    %389 = math.tanh %388 : vector<8x32xf32>
    %390 = arith.mulf %385, %389 : vector<8x32xf32>
    %391 = arith.index_cast %370 : i32 to index
    %c0_112 = arith.constant 0 : index
    %392 = vector.load %arg20[%391, %c0_112] : memref<64x32xf32, #tpu.memory_space<vmem>>, vector<8x32xf32>
    tpu.vector_store %arg20[%391, %c0_112], %390 {strides = array<i32>} : memref<64x32xf32, #tpu.memory_space<vmem>>, vector<8x32xf32>,
    %c7_i32_113 = arith.constant 7 : i32
    %c8_i32_114 = arith.constant 8 : i32
    %393 = arith.muli %c7_i32_113, %c8_i32_114 : i32
    %394 = tpu.assume_multiple %393, 8 : i32
    %cst_115 = arith.constant dense<0.000000e+00> : vector<8x128xf32>
    %395 = tpu.matmul %390, %223, %cst_115 {dimension_numbers = #tpu.dot_dimension_numbers<[1], [0], [0], [1], [0, 0, 1, 1], [], []>} : vector<8x32xf32>, vector<32x128xf32>, vector<8x128xf32> -> vector<8x128xf32>
    %396 = arith.index_cast %394 : i32 to index
    %c0_116 = arith.constant 0 : index
    %397 = vector.load %arg18[%396, %c0_116] : memref<64x128xf32, #tpu.memory_space<vmem>>, vector<8x128xf32>
    %398 = arith.addf %395, %397 : vector<8x128xf32>
    %399 = arith.negf %398 : vector<8x128xf32>
    %400 = math.exp %399 : vector<8x128xf32>
    %cst_117 = arith.constant 1.000000e+00 : f32
    %401 = vector.broadcast %cst_117 : f32 to vector<8x128xf32>
    %402 = arith.addf %401, %400 : vector<8x128xf32>
    %403 = arith.divf %401, %402 : vector<8x128xf32>
    %404 = math.tanh %398 : vector<8x128xf32>
    %405 = arith.select %13, %404, %403 : vector<8x128xi1>, vector<8x128xf32>
    %406 = vector.extract_strided_slice %405 {offsets = [0, 0], sizes = [8, 32], strides = [1, 1]} : vector<8x128xf32> to vector<8x32xf32>
    %407 = vector.extract_strided_slice %405 {offsets = [0, 32], sizes = [8, 32], strides = [1, 1]} : vector<8x128xf32> to vector<8x32xf32>
    %408 = vector.extract_strided_slice %405 {offsets = [0, 64], sizes = [8, 32], strides = [1, 1]} : vector<8x128xf32> to vector<8x32xf32>
    %409 = vector.extract_strided_slice %405 {offsets = [0, 96], sizes = [8, 32], strides = [1, 1]} : vector<8x128xf32> to vector<8x32xf32>
    %410 = arith.mulf %407, %388 : vector<8x32xf32>
    %411 = arith.mulf %406, %408 : vector<8x32xf32>
    %412 = arith.addf %410, %411 : vector<8x32xf32>
    %413 = math.tanh %412 : vector<8x32xf32>
    %414 = arith.mulf %409, %413 : vector<8x32xf32>
    %415 = arith.index_cast %394 : i32 to index
    %c0_118 = arith.constant 0 : index
    %416 = vector.load %arg20[%415, %c0_118] : memref<64x32xf32, #tpu.memory_space<vmem>>, vector<8x32xf32>
    tpu.vector_store %arg20[%415, %c0_118], %414 {strides = array<i32>} : memref<64x32xf32, #tpu.memory_space<vmem>>, vector<8x32xf32>,
    %c8_i32_119 = arith.constant 8 : i32
    %c0_120 = arith.constant 0 : index
    %c0_121 = arith.constant 0 : index
    %417 = vector.load %arg20[%c0_120, %c0_121] : memref<64x32xf32, #tpu.memory_space<vmem>>, vector<64x32xf32>
    %c0_122 = arith.constant 0 : index
    %c0_123 = arith.constant 0 : index
    %418 = vector.load %arg10[%c0_122, %c0_123] : memref<32x1xf32, #tpu.memory_space<vmem>>, vector<32x1xf32>
    %cst_124 = arith.constant dense<0.000000e+00> : vector<64x1xf32>
    %419 = tpu.matmul %417, %418, %cst_124 {dimension_numbers = #tpu.dot_dimension_numbers<[1], [0], [0], [1], [0, 0, 1, 1], [], []>} : vector<64x32xf32>, vector<32x1xf32>, vector<64x1xf32> -> vector<64x1xf32>
    %c0_125 = arith.constant 0 : index
    %c0_126 = arith.constant 0 : index
    %420 = vector.load %arg11[%c0_125, %c0_126] : memref<1x1xf32, #tpu.memory_space<vmem>>, vector<1x1xf32>
    %421 = vector.broadcast %420 : vector<1x1xf32> to vector<64x1xf32>
    %422 = arith.addf %419, %421 : vector<64x1xf32>
    %423 = vector.shape_cast %422 : vector<64x1xf32> to vector<8x8x1xf32>
    %cst_127 = arith.constant dense<0xFF800000> : vector<8x1xf32>
    %424 = vector.multi_reduction <maximumf>, %423, %cst_127 [0] : vector<8x8x1xf32> to vector<8x1xf32>
    %425 = vector.shape_cast %424 : vector<8x1xf32> to vector<1x8x1xf32>
    %426 = vector.broadcast %425 : vector<1x8x1xf32> to vector<8x8x1xf32>
    %427 = arith.subf %423, %426 : vector<8x8x1xf32>
    %428 = math.exp %427 : vector<8x8x1xf32>
    %cst_128 = arith.constant dense<0.000000e+00> : vector<8x1xf32>
    %429 = vector.multi_reduction <add>, %428, %cst_128 [0] : vector<8x8x1xf32> to vector<8x1xf32>
    %430 = vector.shape_cast %429 : vector<8x1xf32> to vector<1x8x1xf32>
    %431 = tpu.reciprocal %430 {approx = true} : vector<1x8x1xf32> -> vector<1x8x1xf32>
    %432 = vector.broadcast %431 : vector<1x8x1xf32> to vector<8x8x1xf32>
    %433 = arith.mulf %428, %432 : vector<8x8x1xf32>
    %c0_129 = arith.constant 0 : index
    %c0_130 = arith.constant 0 : index
    %434 = vector.load %arg12[%c0_129, %c0_130] : memref<32x32xf32, #tpu.memory_space<vmem>>, vector<32x32xf32>
    %cst_131 = arith.constant dense<0.000000e+00> : vector<64x32xf32>
    %435 = tpu.matmul %417, %434, %cst_131 {dimension_numbers = #tpu.dot_dimension_numbers<[1], [0], [0], [1], [0, 0, 1, 1], [], []>} : vector<64x32xf32>, vector<32x32xf32>, vector<64x32xf32> -> vector<64x32xf32>
    %c0_132 = arith.constant 0 : index
    %c0_133 = arith.constant 0 : index
    %436 = vector.load %arg13[%c0_132, %c0_133] : memref<1x32xf32, #tpu.memory_space<vmem>>, vector<1x32xf32>
    %437 = vector.broadcast %436 : vector<1x32xf32> to vector<64x32xf32>
    %438 = arith.addf %435, %437 : vector<64x32xf32>
    %439 = math.tanh %438 : vector<64x32xf32>
    %c0_134 = arith.constant 0 : index
    %c0_135 = arith.constant 0 : index
    %440 = vector.load %arg17[%c0_134, %c0_135] : memref<64x32xf32, #tpu.memory_space<vmem>>, vector<64x32xf32>
    %441 = arith.mulf %439, %440 : vector<64x32xf32>
    %442 = vector.shape_cast %441 : vector<64x32xf32> to vector<8x8x32xf32>
    %443 = vector.broadcast %433 : vector<8x8x1xf32> to vector<8x8x32xf32>
    %444 = arith.mulf %443, %442 : vector<8x8x32xf32>
    %cst_136 = arith.constant dense<0.000000e+00> : vector<8x32xf32>
    %445 = vector.multi_reduction <add>, %444, %cst_136 [0] : vector<8x8x32xf32> to vector<8x32xf32>
    %c0_137 = arith.constant 0 : index
    %c0_138 = arith.constant 0 : index
    %446 = vector.load %arg14[%c0_137, %c0_138] : memref<32x2xf32, #tpu.memory_space<vmem>>, vector<32x2xf32>
    %cst_139 = arith.constant dense<0.000000e+00> : vector<8x2xf32>
    %447 = tpu.matmul %445, %446, %cst_139 {dimension_numbers = #tpu.dot_dimension_numbers<[1], [0], [0], [1], [0, 0, 1, 1], [], []>} : vector<8x32xf32>, vector<32x2xf32>, vector<8x2xf32> -> vector<8x2xf32>
    %c0_140 = arith.constant 0 : index
    %c0_141 = arith.constant 0 : index
    %448 = vector.load %arg15[%c0_140, %c0_141] : memref<1x2xf32, #tpu.memory_space<vmem>>, vector<1x2xf32>
    %449 = vector.broadcast %448 : vector<1x2xf32> to vector<8x2xf32>
    %450 = arith.addf %447, %449 : vector<8x2xf32>
    %c0_142 = arith.constant 0 : index
    %c0_143 = arith.constant 0 : index
    %451 = vector.load %arg16[%c0_142, %c0_143] : memref<8x2xf32, #tpu.memory_space<vmem>>, vector<8x2xf32>
    tpu.vector_store %arg16[%c0_142, %c0_143], %450 {strides = array<i32>} : memref<8x2xf32, #tpu.memory_space<vmem>>, vector<8x2xf32>,
    return
  }
  func.func @transform_0(%arg0: i32) -> (i32, i32, i32) {
    %c0_i32 = arith.constant 0 : i32
    %c0_i32_0 = arith.constant 0 : i32
    %c0_i32_1 = arith.constant 0 : i32
    return %c0_i32, %arg0, %c0_i32_0 : i32, i32, i32
  }
  func.func @transform_1(%arg0: i32) -> (i32, i32) {
    %c0_i32 = arith.constant 0 : i32
    %c0_i32_0 = arith.constant 0 : i32
    %c0_i32_1 = arith.constant 0 : i32
    return %c0_i32, %c0_i32_0 : i32, i32
  }
  func.func @transform_2(%arg0: i32) -> (i32, i32) {
    %c0_i32 = arith.constant 0 : i32
    %c0_i32_0 = arith.constant 0 : i32
    %c0_i32_1 = arith.constant 0 : i32
    return %c0_i32, %c0_i32_0 : i32, i32
  }
  func.func @transform_3(%arg0: i32) -> (i32, i32) {
    %c0_i32 = arith.constant 0 : i32
    %c0_i32_0 = arith.constant 0 : i32
    %c0_i32_1 = arith.constant 0 : i32
    return %c0_i32, %c0_i32_0 : i32, i32
  }
  func.func @transform_4(%arg0: i32) -> (i32, i32) {
    %c0_i32 = arith.constant 0 : i32
    %c0_i32_0 = arith.constant 0 : i32
    %c0_i32_1 = arith.constant 0 : i32
    return %c0_i32, %c0_i32_0 : i32, i32
  }
  func.func @transform_5(%arg0: i32) -> (i32, i32) {
    %c0_i32 = arith.constant 0 : i32
    %c0_i32_0 = arith.constant 0 : i32
    %c0_i32_1 = arith.constant 0 : i32
    return %c0_i32, %c0_i32_0 : i32, i32
  }
  func.func @transform_6(%arg0: i32) -> (i32, i32) {
    %c0_i32 = arith.constant 0 : i32
    %c0_i32_0 = arith.constant 0 : i32
    %c0_i32_1 = arith.constant 0 : i32
    return %c0_i32, %c0_i32_0 : i32, i32
  }
  func.func @transform_7(%arg0: i32) -> (i32, i32) {
    %c0_i32 = arith.constant 0 : i32
    %c0_i32_0 = arith.constant 0 : i32
    %c0_i32_1 = arith.constant 0 : i32
    return %c0_i32, %c0_i32_0 : i32, i32
  }
  func.func @transform_8(%arg0: i32) -> (i32, i32) {
    %c0_i32 = arith.constant 0 : i32
    %c0_i32_0 = arith.constant 0 : i32
    %c0_i32_1 = arith.constant 0 : i32
    return %c0_i32, %c0_i32_0 : i32, i32
  }
  func.func @transform_9(%arg0: i32) -> (i32, i32) {
    %c0_i32 = arith.constant 0 : i32
    %c0_i32_0 = arith.constant 0 : i32
    %c0_i32_1 = arith.constant 0 : i32
    return %c0_i32, %c0_i32_0 : i32, i32
  }
  func.func @transform_10(%arg0: i32) -> (i32, i32) {
    %c0_i32 = arith.constant 0 : i32
    %c0_i32_0 = arith.constant 0 : i32
    %c0_i32_1 = arith.constant 0 : i32
    return %c0_i32, %c0_i32_0 : i32, i32
  }
  func.func @transform_11(%arg0: i32) -> (i32, i32) {
    %c0_i32 = arith.constant 0 : i32
    %c0_i32_0 = arith.constant 0 : i32
    %c0_i32_1 = arith.constant 0 : i32
    return %c0_i32, %c0_i32_0 : i32, i32
  }
  func.func @transform_12(%arg0: i32) -> (i32, i32) {
    %c0_i32 = arith.constant 0 : i32
    %c0_i32_0 = arith.constant 0 : i32
    %c0_i32_1 = arith.constant 0 : i32
    return %c0_i32, %c0_i32_0 : i32, i32
  }
  func.func @transform_13(%arg0: i32) -> (i32, i32) {
    %c0_i32 = arith.constant 0 : i32
    %c0_i32_0 = arith.constant 0 : i32
    %c0_i32_1 = arith.constant 0 : i32
    return %c0_i32, %c0_i32_0 : i32, i32
  }
  func.func @transform_14(%arg0: i32) -> (i32, i32) {
    %c0_i32 = arith.constant 0 : i32
    %c0_i32_0 = arith.constant 0 : i32
    %c0_i32_1 = arith.constant 0 : i32
    return %c0_i32, %c0_i32_0 : i32, i32
  }
  func.func @transform_15(%arg0: i32) -> (i32, i32) {
    %c0_i32 = arith.constant 0 : i32
    %c0_i32_0 = arith.constant 0 : i32
    return %arg0, %c0_i32 : i32, i32
  }
}

</mosaic_0001>

<bundles_post_ra>
// kernel: tpu_custom_call.1
= control target key start
LH: loop header
LB: loop body
LE: loop exit
PB: predicated region body
PF: predicated region fallthrough
CT: control target
= control target key end

     0   :  { %s4493_s0 = inlined_call_operand.vmem [shape: f32[8,8,16], index: 0, kind: input, shape index: {}]   ;;  %s4494_s1 = inlined_call_operand.hbm [shape: f32[16,32], index: 1, kind: input, shape index: {}]   ;;  %s4495_s2 = inlined_call_operand.vmem [shape: f32[1,32], index: 2, kind: input, shape index: {}]   ;;  %s4496_s3 = inlined_call_operand.hbm [shape: f32[32,128], index: 3, kind: input, shape index: {}]   ;;  %s4497_s4 = inlined_call_operand.hbm [shape: f32[32,128], index: 4, kind: input, shape index: {}]   ;;  %s4498_s5 = inlined_call_operand.hbm [shape: f32[1,128], index: 5, kind: input, shape index: {}]   ;;  %s4499_s6 = inlined_call_operand.hbm [shape: f32[32,128], index: 6, kind: input, shape index: {}]   ;;  %s4500_s7 = inlined_call_operand.vmem [shape: f32[32,128], index: 7, kind: input, shape index: {}]   ;;  %s4501_s8 = inlined_call_operand.vmem [shape: f32[1,128], index: 8, kind: input, shape index: {}]   ;;  %s4502_s9 = inlined_call_operand.vmem [shape: f32[32,1], index: 9, kind: input, shape index: {}]   ;;  %s4503_s10 = inlined_call_operand.<no memory space> [shape: f32[1,1], index: 10, kind: input, shape index: {}]   ;;  %s4504_s11 = inlined_call_operand.hbm [shape: f32[32,32], index: 11, kind: input, shape index: {}]   ;;  %s4505_s12 = inlined_call_operand.vmem [shape: f32[1,32], index: 12, kind: input, shape index: {}]   ;;  %s4506_s13 = inlined_call_operand.vmem [shape: f32[32,2], index: 13, kind: input, shape index: {}]   ;;  %s4507_s14 = inlined_call_operand.vmem [shape: f32[1,2], index: 14, kind: input, shape index: {}]   ;;  %s4508_s15 = inlined_call_operand.vmem [shape: f32[8,2], index: 15, kind: output, shape index: {}]  }
   0x1   :  { %v20_v0 = vstv %s4503_s10 }
   0x2   :  { %21 = vst [vmem:[#allocation6] sm:$0x1] %v20_v0 }
   0x3   :  { %22 = vsyncpa [#allocation8], 0 }
   0x4   :  { %23 = vsyncpa [#allocation10], 0 }
   0x5   :  { %24 = vsyncpa [#allocation13], 0 }
   0x6   :  { %25 = vsyncpa [#allocation16], 0  ;;  %s3749_s20 = smov [#allocation9]   ;;  %s3750_s22 = smov [#allocation12]  }
   0x7   :  { %s47_s21 = sshll.u32 %s3749_s20, 4  ;;  %s72_s23 = sshll.u32 %s3750_s22, 4  ;;  %s48_s21 = int_to_ptr.vmem [resolvable:$true] %s47_s21  ;;  %s3846_s23 = int_to_ptr.vmem [resolvable:$true] %s72_s23 }
   0x8   :  { %s3609_s26 = scalar_lea.hbm %s4496_s3, 512 }
   0x9   :  { %p3610_p0 = scmp.ne.s32.totalorder %s4496_s3, %s3609_s26  ;;  %p3613_p1 = scmp.lt.u32.totalorder %s3609_s26, %s4496_s3 }
   0xb   :  { %p3615_p2 = pnand %p3613_p1, %p3610_p0 }
   0xd   :  { %3618 = shalt.err (!%p3615_p2)
}
   0xe   :  { %s3619_s30 = scalar_lea.vmem %s48_s21, 512  ;;  %p3624_p4 = scmp.lt.s32.totalorder %s48_s21, %s48_s21 }
   0xf   :  { %p3620_p3 = scmp.ne.s32.totalorder %s48_s21, %s3619_s30  ;;  %p3625_p5 = scmp.lt.s32.totalorder %s3619_s30, %s3619_s30 }
  0x11   :  { %p3626_p6 = por %p3625_p5, %p3624_p4 }
  0x13   :  { %p3627_p7 = pnand %p3626_p6, %p3620_p3 }
  0x15   :  { %3630 = shalt.err (!%p3627_p7)
}
  0x16   :  { %s3751_s16 = smov 128   ;;  %s3752_s17 = smov 8  }
  0x17   :  { %53 = dma.hbm_to_vmem [thread:$0]  %s4496_s3, 512, %s48_s21, [#allocation10], %s3751_s16, %s3751_s16, %s3752_s17  }
  0x18   :  { %s3631_s24 = scalar_lea.hbm %s4498_s5, 16 }
  0x19   :  { %p3632_p8 = scmp.ne.s32.totalorder %s4498_s5, %s3631_s24  ;;  %p3635_p9 = scmp.lt.u32.totalorder %s3631_s24, %s4498_s5 }
  0x1b   :  { %p3637_p10 = pnand %p3635_p9, %p3632_p8 }
  0x1d   :  { %3640 = shalt.err (!%p3637_p10)
}
  0x1e   :  { %s3641_s10 = scalar_lea.vmem %s3846_s23, 16  ;;  %s3645_s3 = scalar_lea.vmem %s3846_s23, 32 }
  0x1f   :  { %p3642_p11 = scmp.ne.s32.totalorder %s3846_s23, %s3641_s10  ;;  %p3646_p12 = scmp.lt.s32.totalorder %s3846_s23, %s3846_s23 }
  0x20   :  { %p3647_p13 = scmp.lt.s32.totalorder %s3645_s3, %s3641_s10 }
  0x22   :  { %p3648_p0 = por %p3647_p13, %p3646_p12 }
  0x24   :  { %p3649_p1 = pnand %p3648_p0, %p3642_p11 }
  0x26   :  { %3652 = shalt.err (!%p3649_p1)
}
  0x27   :  { %75 = dma.hbm_to_vmem [thread:$0]  %s4498_s5, 16, %s3846_s23, [#allocation13]  }
  0x28   :  { %s3753_s30 = smov [#allocation7]   ;;  %s3754_s19 = smov [#allocation11]  }
  0x29   :  { %s33_s18 = sshll.u32 %s3753_s30, 4  ;;  %s59_s20 = sshll.u32 %s3754_s19, 4  ;;  %s34_s18 = int_to_ptr.vmem [resolvable:$true] %s33_s18  ;;  %s3881_s20 = int_to_ptr.vmem [resolvable:$true] %s59_s20 }
  0x2a   :  { %s3653_s25 = scalar_lea.hbm %s4494_s1, 256 }
  0x2b   :  { %p3654_p2 = scmp.ne.s32.totalorder %s4494_s1, %s3653_s25  ;;  %p3657_p3 = scmp.lt.u32.totalorder %s3653_s25, %s4494_s1 }
  0x2d   :  { %p3659_p4 = pnand %p3657_p3, %p3654_p2 }
  0x2f   :  { %3662 = shalt.err (!%p3659_p4)
}
  0x30   :  { %s3663_s5 = scalar_lea.vmem %s34_s18, 256  ;;  %p3668_p6 = scmp.lt.s32.totalorder %s34_s18, %s34_s18 }
  0x31   :  { %p3664_p5 = scmp.ne.s32.totalorder %s34_s18, %s3663_s5  ;;  %p3669_p7 = scmp.lt.s32.totalorder %s3663_s5, %s3663_s5 }
  0x33   :  { %p3670_p8 = por %p3669_p7, %p3668_p6 }
  0x35   :  { %p3671_p9 = pnand %p3670_p8, %p3664_p5 }
  0x37   :  { %3674 = shalt.err (!%p3671_p9)
}
  0x38   :  { %39 = dma.hbm_to_vmem [thread:$0]  %s4494_s1, 256, %s34_s18, [#allocation8], %s3751_s16, %s3751_s16, %s3752_s17  }
  0x39   :  { %s3675_s30 = scalar_lea.hbm %s4497_s4, 512 }
  0x3a   :  { %p3676_p10 = scmp.ne.s32.totalorder %s4497_s4, %s3675_s30  ;;  %p3679_p11 = scmp.lt.u32.totalorder %s3675_s30, %s4497_s4 }
  0x3c   :  { %p3681_p12 = pnand %p3679_p11, %p3676_p10 }
  0x3e   :  { %3684 = shalt.err (!%p3681_p12)
}
  0x3f   :  { %s3685_s26 = scalar_lea.vmem %s3881_s20, 512  ;;  %p3690_p0 = scmp.lt.s32.totalorder %s3881_s20, %s3881_s20 }
  0x40   :  { %p3686_p13 = scmp.ne.s32.totalorder %s3881_s20, %s3685_s26  ;;  %p3691_p1 = scmp.lt.s32.totalorder %s3685_s26, %s3685_s26 }
  0x42   :  { %p3692_p2 = por %p3691_p1, %p3690_p0 }
  0x44   :  { %p3693_p3 = pnand %p3692_p2, %p3686_p13 }
  0x46   :  { %3696 = shalt.err (!%p3693_p3)
}
  0x47   :  { %65 = dma.hbm_to_vmem [thread:$0]  %s4497_s4, 512, %s3881_s20, [#allocation10], %s3751_s16, %s3751_s16, %s3752_s17  }
  0x48   :  { %s3755_s27 = smov [#allocation14]   ;;  %s3756_s10 = smov [#allocation15]  }
  0x49   :  { %s81_s28 = sshll.u32 %s3755_s27, 4  ;;  %s101_s5 = sshll.u32 %s3756_s10, 4  ;;  %s82_s28 = int_to_ptr.vmem [resolvable:$true] %s81_s28  ;;  %s3918_s5 = int_to_ptr.vmem [resolvable:$true] %s101_s5 }
  0x4a   :  { %s3697_s21 = scalar_lea.hbm %s4499_s6, 512 }
  0x4b   :  { %p3698_p4 = scmp.ne.s32.totalorder %s4499_s6, %s3697_s21  ;;  %p3701_p5 = scmp.lt.u32.totalorder %s3697_s21, %s4499_s6 }
  0x4d   :  { %p3703_p6 = pnand %p3701_p5, %p3698_p4 }
  0x4f   :  { %3706 = shalt.err (!%p3703_p6)
}
  0x50   :  { %s3707_s4 = scalar_lea.vmem %s82_s28, 512  ;;  %p3712_p8 = scmp.lt.s32.totalorder %s82_s28, %s82_s28 }
  0x51   :  { %p3708_p7 = scmp.ne.s32.totalorder %s82_s28, %s3707_s4  ;;  %p3713_p9 = scmp.lt.s32.totalorder %s3707_s4, %s3707_s4 }
  0x53   :  { %p3714_p10 = por %p3713_p9, %p3712_p8 }
  0x55   :  { %p3715_p11 = pnand %p3714_p10, %p3708_p7 }
  0x57   :  { %3718 = shalt.err (!%p3715_p11)
}
  0x58   :  { %87 = dma.hbm_to_vmem [thread:$0]  %s4499_s6, 512, %s82_s28, [#allocation13], %s3751_s16, %s3751_s16, %s3752_s17  }
  0x59   :  { %s3719_s1 = scalar_lea.hbm %s4504_s11, 512 }
  0x5a   :  { %p3720_p12 = scmp.ne.s32.totalorder %s4504_s11, %s3719_s1  ;;  %p3723_p13 = scmp.lt.u32.totalorder %s3719_s1, %s4504_s11 }
  0x5c   :  { %p3725_p0 = pnand %p3723_p13, %p3720_p12 }
  0x5e   :  { %3728 = shalt.err (!%p3725_p0)
}
  0x5f   :  { %s3729_s3 = scalar_lea.vmem %s3918_s5, 512  ;;  %p3734_p2 = scmp.lt.s32.totalorder %s3918_s5, %s3918_s5 }
  0x60   :  { %p3730_p1 = scmp.ne.s32.totalorder %s3918_s5, %s3729_s3  ;;  %p3735_p3 = scmp.lt.s32.totalorder %s3729_s3, %s3729_s3 }
  0x62   :  { %p3736_p4 = por %p3735_p3, %p3734_p2 }
  0x64   :  { %p3737_p5 = pnand %p3736_p4, %p3730_p1 }
  0x66   :  { %3740 = shalt.err (!%p3737_p5)
}
  0x67   :  { %107 = dma.hbm_to_vmem [thread:$0]  %s4504_s11, 512, %s3918_s5, [#allocation16], %s3751_s16, %s3751_s16, %s3752_s17  }
  0x68   :  { %3741 = dma.done.wait [#allocation8], 256  }
  0x69   :  { %3742 = vsyncadd [#allocation8], 4294967040 }
  0x6a   :  { %3743 = dma.done.wait [#allocation10], 1024  }
  0x6b   :  { %3744 = vsyncadd [#allocation10], 4294966272 }
  0x6c   :  { %3745 = dma.done.wait [#allocation13], 528  }
  0x6d   :  { %3746 = vsyncadd [#allocation13], 4294966768 }
  0x6e   :  { %3747 = dma.done.wait [#allocation16], 512  }
  0x6f   :  { %3748 = vsyncadd [#allocation16], 4294966784  ;;  %vm149_vm0 = vcmask 130048   ;;  %v140_v1 = vld [vmem:[#allocation7] sm:$0xff]  ;;  %v141_v2 = vld [vmem:[#allocation7 + $0x8] sm:$0xff]  ;;  %v3757_v12 = vmov 0.0|0.0   ;;  %v288_v60 = vlaneseq }
  0x70   :  { %v132_v3 = vld [vmem:[%s4493_s0] sm:$0xff]  ;;  %v3293_v4 = vpack.c.bf16 %v141_v2, %v140_v1  ;;  %v449_v5 = vld [vmem:[#allocation11] sm:$0xff]  ;;  %v133_v9 = vld [vmem:[%s4493_s0 + $0x8] sm:$0xff]  ;;  %vm3758_vm1 = vmmov 0   ;;  %v3759_v25 = vmov 0.0   ;;  %vm279_vm2 = vcmask 261120  }
  0x71   :  { %3014 = vmatprep.mubr.msk.f32.mxu0 %vm149_vm0, %v132_v3  ;;  %v450_v6 = vld [vmem:[#allocation11 + $0x8] sm:$0xff]  ;;  %v301_v7 = vld [vmem:[#allocation9] sm:$0xff]  ;;  %v137_v16 = vld [vmem:[%s4493_s0 + $0x28] sm:$0xff]  ;;  %v289_v62 = vand.u32 127, %v288_v60  ;;  %s3761_s10 = smov 32   ;;  %vm2429_vm6 = vcmask 7168  }
  0x72   :  { %3294 = vmatprep.subr.bf16.mxu0 %v3293_v4  ;;  %v302_v8 = vld [vmem:[#allocation9 + $0x8] sm:$0xff]  ;;  %v3962_v10 = vpack.c.bf16 %v450_v6, %v449_v5  ;;  %v134_v13 = vld [vmem:[%s4493_s0 + $0x10] sm:$0xff]  ;;  %v303_v17 = vld [vmem:[#allocation9 + $0x10] sm:$0xff]  ;;  %vm2780_vm7 = vcmask 15360  }
  0x73   :  { %3296 = vmatpush3.bf16.msra.mxu0 %v3293_v4  ;;  %v3297_v11 = vpack.c.bf16 %v302_v8, %v301_v7  ;;  %v135_v14 = vld [vmem:[%s4493_s0 + $0x18] sm:$0xff]  ;;  %v136_v15 = vld [vmem:[%s4493_s0 + $0x20] sm:$0xff]  ;;  %v304_v18 = vld [vmem:[#allocation9 + $0x18] sm:$0xff]  ;;  %vm290_vm3 = vcmp.ge.s32.totalorder %v289_v62, 64  ;;  %vm291_vm4 = vcmp.lt.s32.totalorder %v289_v62, 96 }
  0x74   :  { %3305 = vmatprep.subr.bf16.mxu0 %v3757_v12  ;;  %v138_v19 = vld [vmem:[%s4493_s0 + $0x30] sm:$0xff]  ;;  %v3301_v20 = vpack.c.bf16 %v304_v18, %v303_v17  ;;  %v139_v21 = vld [vmem:[%s4493_s0 + $0x38] sm:$0xff]  ;;  %v451_v22 = vld [vmem:[#allocation11 + $0x10] sm:$0xff] }
  0x75   :  { %3298 = vmatprep.subr.bf16.mxu1 %v3297_v11  ;;  %v452_v23 = vld [vmem:[#allocation11 + $0x18] sm:$0xff]  ;;  %v2790_v26 = vld [vmem:[%s4495_s2] ss:$0 sm:$0xff]  ;;  %v4031_v53 = vld [vmem:[#allocation12] ss:$0 sm:$0xff]  ;;  %s3760_s2 = smov 64  }
  0x76   :  { %3015 = vmatmul.mubr.msk.f32.vlgmr.msra.gmra.mrb[0].mxu0 %vm149_vm0, %v133_v9  ;;  %3300 = vmatpush3.bf16.msra.mxu1 %v3297_v11  ;;  %v3992_v24 = vpack.c.bf16 %v452_v23, %v451_v22  ;;  %vm4042_vm5 = vmand %vm290_vm3, %vm291_vm4 }
  0x77   :  { %3017 = vmatprep.mubr.msk.f32.mxu0 %vm149_vm0, %v134_v13  ;;  %3307 = vmatpush3.bf16.msra.mxu0 %v3962_v10 }
  0x78   :  { %3308 = vmatprep.subr.bf16.mxu0 %v3757_v12  ;;  %3302 = vmatprep.subr.bf16.mxu1 %v3301_v20 }
  0x7a   :  { %3018 = vmatmul.mubr.msk.f32.gmra.mrb[2].mxu0 %vm149_vm0, %v135_v14  ;;  %3304 = vmatpush3.bf16.msra.mxu1 %v3301_v20 }
  0x7b   :  { %3020 = vmatprep.mubr.msk.f32.mxu0 %vm149_vm0, %v136_v15  ;;  %3311 = vmatprep.subr.bf16.mxu1 %v3757_v12 }
  0x7c   :  { %3310 = vmatpush3.bf16.msra.mxu0 %v3992_v24 }
  0x7d   :  { %3317 = vmatprep.subr.bf16.mxu0 %v3757_v12 }
  0x7e   :  { %3021 = vmatmul.mubr.msk.f32.gmra.mrb[4].mxu0 %vm149_vm0, %v137_v16 }
  0x7f   :  { %3023 = vmatprep.mubr.msk.f32.mxu0 %vm149_vm0, %v138_v19 }
  0x82   :  { %3024 = vmatmul.mubr.msk.f32.gmra.mrb[6].mxu0 %vm149_vm0, %v139_v21 }
  0x83   :  { %3054 = vmatprep.mubr.msk.f32.mxu0 %vm3758_vm1, %v3759_v25 }
  0x86   :  { %3055 = vmatmul.mubr.f32.vlgmr.msra.gmra.mrb[8].mxu0 %v3759_v25 }
  0x87   :  { %3319 = vmatpush3.bf16.msra.mxu0 %v3962_v10  ;;  %3076 = vmatprep.mubr.msk.f32.mxu0 %vm3758_vm1, %v3759_v25 }
  0x88   :  { %3320 = vmatprep.subr.bf16.mxu0 %v3757_v12 }
  0x8b   :  { %3322 = vmatpush3.bf16.msra.mxu0 %v3992_v24 }
  0x8c   :  { %3329 = vmatprep.subr.bf16.mxu0 %v3757_v12 }
 0x149   :  { %v3016_v27 = vpop.f32.mrb[0].mxu0 }
 0x14a   :  { %v246_v28 = vadd.f32 %v3016_v27, %v2790_v26  ;;  %v240_v29 = vpop.f32.mrb[1].mxu0 }
 0x14b   :  { %v241_v30 = vadd.f32 %v2790_v26, %v240_v29 }
 0x14c   :  { %281 = vst.msk [vmem:[#allocation2 + $0x8] sm:$0xff] %vm279_vm2, %v246_v28  ;;  %v294_v33 = vmax.f32 %v246_v28, 0.0 }
 0x14d   :  { %280 = vst.msk [vmem:[#allocation2] sm:$0xff] %vm279_vm2, %v241_v30  ;;  %v293_v31 = vmax.f32 %v241_v30, 0.0  ;;  %v3019_v32 = vpop.f32.mrb[2].mxu0 }
 0x14e   :  { %v256_v34 = vadd.f32 %v3019_v32, %v2790_v26  ;;  %v250_v35 = vpop.f32.mrb[3].mxu0 }
 0x14f   :  { %3034 = vmatprep.mubr.msk.f32.mxu1 %vm279_vm2, %v293_v31  ;;  %v251_v36 = vadd.f32 %v2790_v26, %v250_v35 }
 0x150   :  { %3035 = vmatmul.mubr.msk.f32.vlgmr.msra.gmra.mrb[0].mxu1 %vm279_vm2, %v294_v33  ;;  %283 = vst.msk [vmem:[#allocation2 + $0x18] sm:$0xff] %vm279_vm2, %v256_v34  ;;  %v296_v37 = vmax.f32 %v256_v34, 0.0 }
 0x151   :  { %282 = vst.msk [vmem:[#allocation2 + $0x10] sm:$0xff] %vm279_vm2, %v251_v36  ;;  %v295_v38 = vmax.f32 %v251_v36, 0.0  ;;  %v3022_v39 = vpop.f32.mrb[4].mxu0  ;;  %3313 = vmatpush3.bf16.msra.mxu1 %v3962_v10 }
 0x152   :  { %v266_v40 = vadd.f32 %v3022_v39, %v2790_v26  ;;  %v260_v41 = vpop.f32.mrb[5].mxu0  ;;  %3314 = vmatprep.subr.bf16.mxu1 %v3757_v12 }
 0x153   :  { %v261_v42 = vadd.f32 %v2790_v26, %v260_v41  ;;  %3037 = vmatprep.mubr.msk.f32.mxu1 %vm279_vm2, %v295_v38 }
 0x154   :  { %285 = vst.msk [vmem:[#allocation2 + $0x28] sm:$0xff] %vm279_vm2, %v266_v40  ;;  %v298_v43 = vmax.f32 %v266_v40, 0.0  ;;  %3038 = vmatmul.mubr.msk.f32.gmra.mrb[2].mxu1 %vm279_vm2, %v296_v37 }
 0x155   :  { %284 = vst.msk [vmem:[#allocation2 + $0x20] sm:$0xff] %vm279_vm2, %v261_v42  ;;  %v297_v44 = vmax.f32 %v261_v42, 0.0  ;;  %3316 = vmatpush3.bf16.msra.mxu1 %v3992_v24  ;;  %v3025_v45 = vpop.f32.mrb[6].mxu0 }
 0x156   :  { %3323 = vmatprep.subr.bf16.mxu1 %v3757_v12  ;;  %v276_v46 = vadd.f32 %v3025_v45, %v2790_v26  ;;  %v270_v47 = vpop.f32.mrb[7].mxu0 }
 0x157   :  { %3040 = vmatprep.mubr.msk.f32.mxu1 %vm279_vm2, %v297_v44  ;;  %v271_v48 = vadd.f32 %v2790_v26, %v270_v47 }
 0x158   :  { %3041 = vmatmul.mubr.msk.f32.gmra.mrb[4].mxu1 %vm279_vm2, %v298_v43  ;;  %287 = vst.msk [vmem:[#allocation2 + $0x38] sm:$0xff] %vm279_vm2, %v276_v46  ;;  %v300_v49 = vmax.f32 %v276_v46, 0.0 }
 0x159   :  { %286 = vst.msk [vmem:[#allocation2 + $0x30] sm:$0xff] %vm279_vm2, %v271_v48  ;;  %v299_v50 = vmax.f32 %v271_v48, 0.0  ;;  %v523_v51 = vpop.f32.mrb[8].mxu0 }
 0x15a   :  { %v3056_v52 = vpop.f32.mrb[9].mxu0 }
 0x15b   :  { %3043 = vmatprep.mubr.msk.f32.mxu1 %vm279_vm2, %v299_v50 }
 0x15c   :  { %3044 = vmatmul.mubr.msk.f32.gmra.mrb[6].mxu1 %vm279_vm2, %v300_v49 }
 0x15d   :  { %3065 = vmatprep.mubr.msk.f32.mxu1 %vm3758_vm1, %v3759_v25 }
 0x223   :  { %v3036_v54 = vpop.f32.mrb[0].mxu1 }
 0x224   :  { %v402_v55 = vpop.f32.mrb[1].mxu1  ;;  %v408_v20 = vadd.f32 %v3036_v54, %v4031_v53 }
 0x225   :  { %v403_v56 = vadd.f32 %v4031_v53, %v402_v55 }
 0x227   :  { %v524_v57 = vadd.f32 %v523_v51, %v403_v56  ;;  %v4034_v63 = vpop.f32.mrb[2].mxu1 }
 0x228   :  { %v4036_v0 = vpop.f32.mrb[3].mxu1 }
 0x229   :  { %v2808_v58 = vmul.f32 -1.442695, %v524_v57  ;;  %v413_v41 = vadd.f32 %v4031_v53, %v4036_v0 }
 0x22b   :  { %3447 = vpow2.f32 %v2808_v58  ;;  %v4038_v1 = vpop.f32.mrb[4].mxu1 }
 0x22c   :  { %3449 = vtanh.f32 %v524_v57  ;;  %v4040_v2 = vpop.f32.mrb[5].mxu1 }
 0x22f   :  { %v4049_v7 = vpop.f32.mrb[6].mxu1 }
 0x230   :  { %v4051_v8 = vpop.f32.mrb[7].mxu1 }
 0x235   :  { %v3448_v59 = vpop.eup %3447 }
 0x236   :  { %v530_v61 = vadd.f32 1.0, %v3448_v59  ;;  %v3450_v4 = vpop.eup %3449 }
 0x238   :  { %3451 = vrcp.f32 %v530_v61  ;;  %v418_v61 = vadd.f32 %v4034_v63, %v4031_v53 }
 0x242   :  { %v3452_v5 = vpop.eup %3451 }
 0x243   :  { %v534_v6 = vsel %vm4042_vm5, %v3450_v4, %v3452_v5 }
 0x244   :  { %537 = vrot.lane.b32.xlu0 %v534_v6, %s3760_s2  ;;  %v535_v13 = vmul.f32 0.0, %v534_v6 }
 0x2b6   :  { %v538_v9 = vpop.permute.xlu0 %537 }
 0x2b7   :  { %v540_v11 = vmul.f32 %v538_v9, %v534_v6 }
 0x2b9   :  { %542 = vrot.lane.b32.xlu0 %v540_v11, %s3761_s10 }
 0x32b   :  { %v543_v14 = vpop.permute.xlu0 %542 }
 0x32c   :  { %v545_v15 = vadd.f32 %v543_v14, %v535_v13 }
 0x32e   :  { %3453 = vtanh.f32 %v545_v15 }
 0x338   :  { %v3454_v16 = vpop.eup %3453 }
 0x339   :  { %548 = vrot.lane.b32.xlu1 %v3454_v16, %s3760_s2 }
 0x3ab   :  { %v549_v17 = vpop.permute.xlu1 %548 }
 0x3ac   :  { %v551_v18 = vmul.f32 %v549_v17, %v534_v6 }
 0x3ae   :  { %553 = vrot.lane.b32.xlu1 %v551_v18, %s3761_s10 }
 0x420   :  { %v554_v19 = vpop.permute.xlu1 %553 }
 0x421   :  { %556 = vst.msk [vmem:[#allocation4] sm:$0xff] %vm279_vm2, %v554_v19  ;;  %3066 = vmatmul.mubr.msk.f32.vlgmr.msra.gmra.mrb[8].mxu1 %vm279_vm2, %v554_v19 }
 0x422   :  { %3325 = vmatpush3.bf16.msra.mxu1 %v3962_v10  ;;  %3087 = vmatprep.mubr.msk.f32.mxu1 %vm3758_vm1, %v3759_v25 }
 0x423   :  { %3326 = vmatprep.subr.bf16.mxu1 %v3757_v12 }
 0x426   :  { %3328 = vmatpush3.bf16.msra.mxu1 %v3992_v24 }
 0x427   :  { %3335 = vmatprep.subr.bf16.mxu1 %v3757_v12 }
 0x4f4   :  { %v627_v21 = vpop.f32.mrb[8].mxu1 }
 0x4f5   :  { %v628_v22 = vadd.f32 %v627_v21, %v408_v20  ;;  %v3067_v23 = vpop.f32.mrb[9].mxu1 }
 0x4f6   :  { %v423_v23 = vadd.f32 %v4031_v53, %v4040_v2 }
 0x4f7   :  { %v2810_v26 = vmul.f32 -1.442695, %v628_v22 }
 0x4f9   :  { %3455 = vpow2.f32 %v2810_v26 }
 0x4fa   :  { %3457 = vtanh.f32 %v628_v22 }
 0x503   :  { %v3456_v27 = vpop.eup %3455 }
 0x504   :  { %v634_v28 = vadd.f32 1.0, %v3456_v27  ;;  %v3458_v29 = vpop.eup %3457 }
 0x506   :  { %3459 = vrcp.f32 %v634_v28 }
 0x510   :  { %v3460_v30 = vpop.eup %3459 }
 0x511   :  { %v638_v31 = vsel %vm4042_vm5, %v3458_v29, %v3460_v30 }
 0x512   :  { %641 = vrot.lane.b32.xlu0 %v638_v31, %s3760_s2  ;;  %v639_v34 = vmul.f32 %v638_v31, %v545_v15 }
 0x584   :  { %v642_v32 = vpop.permute.xlu0 %641 }
 0x585   :  { %v644_v33 = vmul.f32 %v642_v32, %v638_v31 }
 0x587   :  { %646 = vrot.lane.b32.xlu1 %v644_v33, %s3761_s10 }
 0x5f9   :  { %v647_v35 = vpop.permute.xlu1 %646 }
 0x5fa   :  { %v649_v36 = vadd.f32 %v647_v35, %v639_v34 }
 0x5fc   :  { %3461 = vtanh.f32 %v649_v36 }
 0x606   :  { %v3462_v37 = vpop.eup %3461 }
 0x607   :  { %652 = vrot.lane.b32.xlu0 %v3462_v37, %s3760_s2 }
 0x679   :  { %v653_v38 = vpop.permute.xlu0 %652 }
 0x67a   :  { %v655_v39 = vmul.f32 %v653_v38, %v638_v31 }
 0x67c   :  { %657 = vrot.lane.b32.xlu1 %v655_v39, %s3761_s10 }
 0x6ee   :  { %v658_v40 = vpop.permute.xlu1 %657 }
 0x6ef   :  { %661 = vst.msk [vmem:[#allocation4 + $0x8] sm:$0xff] %vm279_vm2, %v658_v40  ;;  %3077 = vmatmul.mubr.msk.f32.vlgmr.msra.gmra.mrb[10].mxu0 %vm279_vm2, %v658_v40 }
 0x6f0   :  { %3331 = vmatpush3.bf16.msra.mxu0 %v3962_v10  ;;  %3098 = vmatprep.mubr.msk.f32.mxu0 %vm3758_vm1, %v3759_v25 }
 0x6f1   :  { %3332 = vmatprep.subr.bf16.mxu0 %v3757_v12 }
 0x6f4   :  { %3334 = vmatpush3.bf16.msra.mxu0 %v3992_v24 }
 0x6f5   :  { %3341 = vmatprep.subr.bf16.mxu0 %v3757_v12 }
 0x7c2   :  { %v732_v42 = vpop.f32.mrb[10].mxu0 }
 0x7c3   :  { %v733_v43 = vadd.f32 %v732_v42, %v413_v41  ;;  %v3078_v44 = vpop.f32.mrb[11].mxu0 }
 0x7c5   :  { %v2812_v45 = vmul.f32 -1.442695, %v733_v43 }
 0x7c7   :  { %3463 = vpow2.f32 %v2812_v45 }
 0x7c8   :  { %3465 = vtanh.f32 %v733_v43  ;;  %v428_v43 = vadd.f32 %v4038_v1, %v4031_v53 }
 0x7d1   :  { %v3464_v46 = vpop.eup %3463 }
 0x7d2   :  { %v739_v47 = vadd.f32 1.0, %v3464_v46  ;;  %v3466_v48 = vpop.eup %3465 }
 0x7d4   :  { %3467 = vrcp.f32 %v739_v47 }
 0x7de   :  { %v3468_v49 = vpop.eup %3467 }
 0x7df   :  { %v743_v50 = vsel %vm4042_vm5, %v3466_v48, %v3468_v49 }
 0x7e0   :  { %746 = vrot.lane.b32.xlu0 %v743_v50, %s3760_s2  ;;  %v744_v54 = vmul.f32 %v743_v50, %v649_v36 }
 0x852   :  { %v747_v51 = vpop.permute.xlu0 %746 }
 0x853   :  { %v749_v52 = vmul.f32 %v747_v51, %v743_v50 }
 0x855   :  { %751 = vrot.lane.b32.xlu1 %v749_v52, %s3761_s10 }
 0x8c7   :  { %v752_v55 = vpop.permute.xlu1 %751 }
 0x8c8   :  { %v754_v56 = vadd.f32 %v752_v55, %v744_v54 }
 0x8ca   :  { %3469 = vtanh.f32 %v754_v56 }
 0x8d4   :  { %v3470_v57 = vpop.eup %3469 }
 0x8d5   :  { %757 = vrot.lane.b32.xlu0 %v3470_v57, %s3760_s2  ;;  %v1301_v57 = vld [vmem:[#allocation14 + $0x8] sm:$0xff] }
 0x947   :  { %v758_v58 = vpop.permute.xlu0 %757 }
 0x948   :  { %v760_v59 = vmul.f32 %v758_v58, %v743_v50 }
 0x94a   :  { %762 = vrot.lane.b32.xlu1 %v760_v59, %s3761_s10 }
 0x9bc   :  { %v763_v60 = vpop.permute.xlu1 %762 }
 0x9bd   :  { %766 = vst.msk [vmem:[#allocation4 + $0x10] sm:$0xff] %vm279_vm2, %v763_v60  ;;  %3088 = vmatmul.mubr.msk.f32.vlgmr.msra.gmra.mrb[10].mxu1 %vm279_vm2, %v763_v60 }
 0x9be   :  { %3337 = vmatpush3.bf16.msra.mxu1 %v3962_v10  ;;  %3109 = vmatprep.mubr.msk.f32.mxu1 %vm3758_vm1, %v3759_v25 }
 0x9bf   :  { %3338 = vmatprep.subr.bf16.mxu1 %v3757_v12 }
 0x9c2   :  { %3340 = vmatpush3.bf16.msra.mxu1 %v3992_v24 }
 0x9c3   :  { %3347 = vmatprep.subr.bf16.mxu1 %v3757_v12 }
 0xa90   :  { %v837_v62 = vpop.f32.mrb[10].mxu1 }
 0xa91   :  { %v838_v0 = vadd.f32 %v837_v62, %v418_v61  ;;  %v3089_v4 = vpop.f32.mrb[11].mxu1  ;;  %v1302_v62 = vld [vmem:[#allocation14 + $0x10] sm:$0xff] }
 0xa93   :  { %v2814_v5 = vmul.f32 -1.442695, %v838_v0 }
 0xa95   :  { %3471 = vpow2.f32 %v2814_v5 }
 0xa96   :  { %3473 = vtanh.f32 %v838_v0  ;;  %v1303_v0 = vld [vmem:[#allocation14 + $0x18] sm:$0xff] }
 0xa97   :  { %v3357_v4 = vpack.c.bf16 %v1303_v0, %v1302_v62 }
 0xa9f   :  { %v3472_v6 = vpop.eup %3471 }
 0xaa0   :  { %v844_v9 = vadd.f32 1.0, %v3472_v6  ;;  %v3474_v11 = vpop.eup %3473  ;;  %v1292_v6 = vld [vmem:[#allocation4] sm:$0xff] }
 0xaa2   :  { %3475 = vrcp.f32 %v844_v9  ;;  %v1293_v9 = vld [vmem:[#allocation4 + $0x8] sm:$0xff] }
 0xaac   :  { %v3476_v13 = vpop.eup %3475 }
 0xaad   :  { %v848_v14 = vsel %vm4042_vm5, %v3474_v11, %v3476_v13  ;;  %v1294_v11 = vld [vmem:[#allocation4 + $0x10] sm:$0xff] }
 0xaae   :  { %851 = vrot.lane.b32.xlu0 %v848_v14, %s3760_s2  ;;  %v849_v63 = vmul.f32 %v848_v14, %v754_v56  ;;  %v1300_v56 = vld [vmem:[#allocation14] sm:$0xff] }
 0xaaf   :  { %v3353_v58 = vpack.c.bf16 %v1301_v57, %v1300_v56 }
 0xb20   :  { %v852_v15 = vpop.permute.xlu0 %851 }
 0xb21   :  { %v854_v16 = vmul.f32 %v852_v15, %v848_v14 }
 0xb23   :  { %856 = vrot.lane.b32.xlu1 %v854_v16, %s3761_s10  ;;  %v433_v16 = vadd.f32 %v4031_v53, %v4051_v8 }
 0xb95   :  { %v857_v17 = vpop.permute.xlu1 %856 }
 0xb96   :  { %v859_v18 = vadd.f32 %v857_v17, %v849_v63 }
 0xb98   :  { %3477 = vtanh.f32 %v859_v18 }
 0xba2   :  { %v3478_v19 = vpop.eup %3477 }
 0xba3   :  { %862 = vrot.lane.b32.xlu0 %v3478_v19, %s3760_s2 }
 0xc15   :  { %v863_v20 = vpop.permute.xlu0 %862 }
 0xc16   :  { %v865_v21 = vmul.f32 %v863_v20, %v848_v14 }
 0xc18   :  { %867 = vrot.lane.b32.xlu1 %v865_v21, %s3761_s10 }
 0xc8a   :  { %v868_v22 = vpop.permute.xlu1 %867 }
 0xc8b   :  { %871 = vst.msk [vmem:[#allocation4 + $0x18] sm:$0xff] %vm279_vm2, %v868_v22  ;;  %3099 = vmatmul.mubr.msk.f32.vlgmr.msra.gmra.mrb[12].mxu0 %vm279_vm2, %v868_v22 }
 0xc8c   :  { %3343 = vmatpush3.bf16.msra.mxu0 %v3962_v10  ;;  %3120 = vmatprep.mubr.msk.f32.mxu0 %vm3758_vm1, %v3759_v25 }
 0xc8d   :  { %3344 = vmatprep.subr.bf16.mxu0 %v3757_v12 }
 0xc90   :  { %3346 = vmatpush3.bf16.msra.mxu0 %v3992_v24 }
 0xc91   :  { %3354 = vmatprep.subr.bf16.mxu0 %v3353_v58 }
 0xc92   :  { %v1295_v13 = vld [vmem:[#allocation4 + $0x18] sm:$0xff] }
 0xd5e   :  { %v942_v26 = vpop.f32.mrb[12].mxu0 }
 0xd5f   :  { %v943_v27 = vadd.f32 %v942_v26, %v423_v23  ;;  %v3100_v28 = vpop.f32.mrb[13].mxu0 }
 0xd61   :  { %v2816_v29 = vmul.f32 -1.442695, %v943_v27 }
 0xd63   :  { %3479 = vpow2.f32 %v2816_v29 }
 0xd64   :  { %3481 = vtanh.f32 %v943_v27 }
 0xd6d   :  { %v3480_v30 = vpop.eup %3479 }
 0xd6e   :  { %v949_v31 = vadd.f32 1.0, %v3480_v30  ;;  %v3482_v32 = vpop.eup %3481 }
 0xd70   :  { %3483 = vrcp.f32 %v949_v31 }
 0xd7a   :  { %v3484_v33 = vpop.eup %3483 }
 0xd7b   :  { %v953_v34 = vsel %vm4042_vm5, %v3482_v32, %v3484_v33 }
 0xd7c   :  { %956 = vrot.lane.b32.xlu0 %v953_v34, %s3760_s2  ;;  %v954_v2 = vmul.f32 %v953_v34, %v859_v18 }
 0xdee   :  { %v957_v35 = vpop.permute.xlu0 %956 }
 0xdef   :  { %v959_v36 = vmul.f32 %v957_v35, %v953_v34 }
 0xdf1   :  { %961 = vrot.lane.b32.xlu1 %v959_v36, %s3761_s10 }
 0xe63   :  { %v962_v37 = vpop.permute.xlu1 %961 }
 0xe64   :  { %v964_v38 = vadd.f32 %v962_v37, %v954_v2  ;;  %v1448_v37 = vld [vmem:[%s4500_s7] sm:$0xff] }
 0xe66   :  { %3485 = vtanh.f32 %v964_v38 }
 0xe70   :  { %v3486_v39 = vpop.eup %3485 }
 0xe71   :  { %967 = vrot.lane.b32.xlu0 %v3486_v39, %s3760_s2 }
 0xee3   :  { %v968_v40 = vpop.permute.xlu0 %967 }
 0xee4   :  { %v970_v41 = vmul.f32 %v968_v40, %v953_v34  ;;  %v1450_v40 = vld [vmem:[%s4500_s7 + $0x10] sm:$0xff] }
 0xee6   :  { %972 = vrot.lane.b32.xlu1 %v970_v41, %s3761_s10  ;;  %v1451_v41 = vld [vmem:[%s4500_s7 + $0x18] sm:$0xff] }
 0xf58   :  { %v973_v42 = vpop.permute.xlu1 %972 }
 0xf59   :  { %976 = vst.msk [vmem:[#allocation4 + $0x20] sm:$0xff] %vm279_vm2, %v973_v42  ;;  %3110 = vmatmul.mubr.msk.f32.vlgmr.msra.gmra.mrb[12].mxu1 %vm279_vm2, %v973_v42  ;;  %v4179_v42 = vpack.c.bf16 %v1451_v41, %v1450_v40 }
 0xf5a   :  { %3349 = vmatpush3.bf16.msra.mxu1 %v3962_v10  ;;  %3131 = vmatprep.mubr.msk.f32.mxu1 %vm3758_vm1, %v3759_v25 }
 0xf5b   :  { %3350 = vmatprep.subr.bf16.mxu1 %v3757_v12 }
 0xf5e   :  { %3352 = vmatpush3.bf16.msra.mxu1 %v3992_v24 }
 0xf5f   :  { %3361 = vmatprep.subr.bf16.mxu1 %v3757_v12 }
 0xf60   :  { %v1296_v14 = vld [vmem:[#allocation4 + $0x20] sm:$0xff] }
0x102c   :  { %v1047_v44 = vpop.f32.mrb[12].mxu1 }
0x102d   :  { %v1048_v45 = vadd.f32 %v1047_v44, %v428_v43  ;;  %v3111_v46 = vpop.f32.mrb[13].mxu1 }
0x102f   :  { %v2818_v47 = vmul.f32 -1.442695, %v1048_v45 }
0x1031   :  { %3487 = vpow2.f32 %v2818_v47  ;;  %v438_v47 = vadd.f32 %v4049_v7, %v4031_v53 }
0x1032   :  { %3489 = vtanh.f32 %v1048_v45 }
0x103b   :  { %v3488_v48 = vpop.eup %3487 }
0x103c   :  { %v1054_v49 = vadd.f32 1.0, %v3488_v48  ;;  %v3490_v10 = vpop.eup %3489 }
0x103e   :  { %3491 = vrcp.f32 %v1054_v49 }
0x1048   :  { %v3492_v50 = vpop.eup %3491 }
0x1049   :  { %v1058_v51 = vsel %vm4042_vm5, %v3490_v10, %v3492_v50  ;;  %v4205_v50 = vld [vmem:[%s4501_s8] ss:$0 sm:$0xff] }
0x104a   :  { %1061 = vrot.lane.b32.xlu0 %v1058_v51, %s3760_s2  ;;  %v1059_v1 = vmul.f32 %v1058_v51, %v964_v38  ;;  %v1449_v38 = vld [vmem:[%s4500_s7 + $0x8] sm:$0xff] }
0x104b   :  { %v4169_v39 = vpack.c.bf16 %v1449_v38, %v1448_v37 }
0x10bc   :  { %v1062_v24 = vpop.permute.xlu0 %1061 }
0x10bd   :  { %v1064_v52 = vmul.f32 %v1062_v24, %v1058_v51 }
0x10bf   :  { %1066 = vrot.lane.b32.xlu1 %v1064_v52, %s3761_s10 }
0x1131   :  { %v1067_v54 = vpop.permute.xlu1 %1066 }
0x1132   :  { %v1069_v55 = vadd.f32 %v1067_v54, %v1059_v1 }
0x1134   :  { %3493 = vtanh.f32 %v1069_v55 }
0x113e   :  { %v3494_v59 = vpop.eup %3493 }
0x113f   :  { %1072 = vrot.lane.b32.xlu0 %v3494_v59, %s3760_s2 }
0x11b1   :  { %v1073_v60 = vpop.permute.xlu0 %1072 }
0x11b2   :  { %v1075_v61 = vmul.f32 %v1073_v60, %v1058_v51 }
0x11b4   :  { %1077 = vrot.lane.b32.xlu1 %v1075_v61, %s3761_s10 }
0x1226   :  { %v1078_v5 = vpop.permute.xlu1 %1077 }
0x1227   :  { %1081 = vst.msk [vmem:[#allocation4 + $0x28] sm:$0xff] %vm279_vm2, %v1078_v5  ;;  %3121 = vmatmul.mubr.msk.f32.vlgmr.msra.gmra.mrb[14].mxu0 %vm279_vm2, %v1078_v5 }
0x1228   :  { %3356 = vmatpush3.bf16.msra.mxu0 %v3353_v58  ;;  %3142 = vmatprep.mubr.msk.f32.mxu0 %vm279_vm2, %v1292_v6 }
0x1229   :  { %3358 = vmatprep.subr.bf16.mxu0 %v3357_v4 }
0x122c   :  { %3360 = vmatpush3.bf16.msra.mxu0 %v3357_v4 }
0x122d   :  { %3373 = vmatprep.subr.bf16.mxu0 %v3757_v12 }
0x122e   :  { %v1297_v15 = vld [vmem:[#allocation4 + $0x28] sm:$0xff] }
0x122f   :  { %3143 = vmatmul.mubr.msk.f32.vlgmr.msra.gmra.mrb[16].mxu0 %vm279_vm2, %v1293_v9 }
0x1230   :  { %3145 = vmatprep.mubr.msk.f32.mxu0 %vm279_vm2, %v1294_v11  ;;  %3375 = vmatpush3.bf16.msra.mxu0 %v4169_v39 }
0x1231   :  { %3376 = vmatprep.subr.bf16.mxu0 %v3757_v12 }
0x1233   :  { %3146 = vmatmul.mubr.msk.f32.gmra.mrb[18].mxu0 %vm279_vm2, %v1295_v13 }
0x1234   :  { %3148 = vmatprep.mubr.msk.f32.mxu0 %vm279_vm2, %v1296_v14  ;;  %3378 = vmatpush3.bf16.msra.mxu0 %v4179_v42 }
0x1235   :  { %3385 = vmatprep.subr.bf16.mxu0 %v3757_v12 }
0x1237   :  { %3149 = vmatmul.mubr.msk.f32.gmra.mrb[20].mxu0 %vm279_vm2, %v1297_v15 }
0x12fa   :  { %v1152_v63 = vpop.f32.mrb[14].mxu0 }
0x12fb   :  { %v1153_v17 = vadd.f32 %v1152_v63, %v433_v16  ;;  %v3122_v18 = vpop.f32.mrb[15].mxu0 }
0x12fd   :  { %v2820_v19 = vmul.f32 -1.442695, %v1153_v17 }
0x12ff   :  { %3495 = vpow2.f32 %v2820_v19 }
0x1300   :  { %3497 = vtanh.f32 %v1153_v17 }
0x1302   :  { %v4145_v20 = vpop.f32.mrb[16].mxu0 }
0x1303   :  { %v1401_v21 = vpop.f32.mrb[17].mxu0 }
0x1304   :  { %v1402_v51 = vadd.f32 %v4205_v50, %v1401_v21 }
0x1306   :  { %v4147_v22 = vpop.f32.mrb[18].mxu0 }
0x1307   :  { %v4149_v23 = vpop.f32.mrb[19].mxu0 }
0x1309   :  { %v3496_v26 = vpop.eup %3495 }
0x130a   :  { %v1159_v27 = vadd.f32 1.0, %v3496_v26  ;;  %v4151_v28 = vpop.f32.mrb[20].mxu0  ;;  %v3498_v8 = vpop.eup %3497 }
0x130b   :  { %v4153_v29 = vpop.f32.mrb[21].mxu0 }
0x130c   :  { %3499 = vrcp.f32 %v1159_v27 }
0x1316   :  { %v3500_v30 = vpop.eup %3499 }
0x1317   :  { %v1163_v31 = vsel %vm4042_vm5, %v3498_v8, %v3500_v30  ;;  %v1407_v30 = vadd.f32 %v4145_v20, %v4205_v50 }
0x1318   :  { %1166 = vrot.lane.b32.xlu0 %v1163_v31, %s3760_s2  ;;  %v1164_v34 = vmul.f32 %v1163_v31, %v1069_v55 }
0x138a   :  { %v1167_v32 = vpop.permute.xlu0 %1166 }
0x138b   :  { %v1169_v33 = vmul.f32 %v1167_v32, %v1163_v31 }
0x138d   :  { %1171 = vrot.lane.b32.xlu1 %v1169_v33, %s3761_s10 }
0x13ff   :  { %v1172_v35 = vpop.permute.xlu1 %1171 }
0x1400   :  { %v4159_v36 = vadd.f32 %v1172_v35, %v1164_v34 }
0x1402   :  { %3501 = vtanh.f32 %v4159_v36 }
0x140c   :  { %v3502_v2 = vpop.eup %3501 }
0x140d   :  { %1177 = vrot.lane.b32.xlu0 %v3502_v2, %s3760_s2 }
0x147f   :  { %v1178_v43 = vpop.permute.xlu0 %1177 }
0x1480   :  { %v1180_v44 = vmul.f32 %v1178_v43, %v1163_v31 }
0x1482   :  { %1182 = vrot.lane.b32.xlu1 %v1180_v44, %s3761_s10 }
0x14f4   :  { %v1183_v45 = vpop.permute.xlu1 %1182 }
0x14f5   :  { %1186 = vst.msk [vmem:[#allocation4 + $0x30] sm:$0xff] %vm279_vm2, %v1183_v45  ;;  %3132 = vmatmul.mubr.msk.f32.vlgmr.msra.gmra.mrb[14].mxu1 %vm279_vm2, %v1183_v45 }
0x14f6   :  { %3363 = vmatpush3.bf16.msra.mxu1 %v4169_v39  ;;  %3162 = vmatprep.mubr.msk.f32.mxu1 %vm3758_vm1, %v3759_v25 }
0x14f7   :  { %3364 = vmatprep.subr.bf16.mxu1 %v3757_v12 }
0x14fa   :  { %3366 = vmatpush3.bf16.msra.mxu1 %v4179_v42 }
0x14fb   :  { %3367 = vmatprep.subr.bf16.mxu1 %v3757_v12 }
0x14fc   :  { %v1298_v46 = vld [vmem:[#allocation4 + $0x30] sm:$0xff] }
0x14fd   :  { %3163 = vmatmul.mubr.f32.vlgmr.msra.gmra.mrb[16].mxu1 %v3759_v25  ;;  %3151 = vmatprep.mubr.msk.f32.mxu0 %vm279_vm2, %v1298_v46 }
0x14fe   :  { %3369 = vmatpush3.bf16.msra.mxu1 %v4169_v39  ;;  %3173 = vmatprep.mubr.msk.f32.mxu1 %vm3758_vm1, %v3759_v25 }
0x14ff   :  { %3370 = vmatprep.subr.bf16.mxu1 %v3757_v12 }
0x1502   :  { %3372 = vmatpush3.bf16.msra.mxu1 %v4179_v42 }
0x1503   :  { %3379 = vmatprep.subr.bf16.mxu1 %v3757_v12 }
0x15c8   :  { %v1257_v48 = vpop.f32.mrb[14].mxu1 }
0x15c9   :  { %v1258_v49 = vadd.f32 %v1257_v48, %v438_v47  ;;  %v3133_v10 = vpop.f32.mrb[15].mxu1 }
0x15cb   :  { %v2822_v60 = vmul.f32 -1.442695, %v1258_v49 }
0x15d0   :  { %v1519_v24 = vpop.f32.mrb[16].mxu1 }
0x15d1   :  { %v1520_v52 = vadd.f32 %v1519_v24, %v1402_v51  ;;  %v3164_v1 = vpop.f32.mrb[17].mxu1 }
0x15d3   :  { %v2832_v54 = vmul.f32 -1.442695, %v1520_v52 }
0x15d5   :  { %3503 = vpow2.f32 %v2832_v54 }
0x15d6   :  { %3505 = vtanh.f32 %v1520_v52  ;;  %v1412_v52 = vadd.f32 %v4205_v50, %v4149_v23 }
0x15df   :  { %v3504_v55 = vpop.eup %3503 }
0x15e0   :  { %v1526_v56 = vadd.f32 1.0, %v3504_v55  ;;  %v3506_v53 = vpop.eup %3505 }
0x15e2   :  { %3507 = vrcp.f32 %v1526_v56 }
0x15e3   :  { %3509 = vpow2.f32 %v2822_v60 }
0x15ec   :  { %v3508_v7 = vpop.eup %3507 }
0x15ed   :  { %v1530_v57 = vsel %vm4042_vm5, %v3506_v53, %v3508_v7  ;;  %v3510_v61 = vpop.eup %3509 }
0x15ee   :  { %1533 = vrot.lane.b32.xlu0 %v1530_v57, %s3760_s2  ;;  %v1531_v62 = vmul.f32 0.0, %v1530_v57  ;;  %v1264_v0 = vadd.f32 1.0, %v3510_v61 }
0x1660   :  { %v1534_v58 = vpop.permute.xlu0 %1533 }
0x1661   :  { %v1536_v59 = vmul.f32 %v1534_v58, %v1530_v57 }
0x1663   :  { %1538 = vrot.lane.b32.xlu1 %v1536_v59, %s3761_s10 }
0x16d5   :  { %v1539_v4 = vpop.permute.xlu1 %1538 }
0x16d6   :  { %v1541_v5 = vadd.f32 %v1539_v4, %v1531_v62 }
0x16d8   :  { %3511 = vtanh.f32 %v1541_v5 }
0x16d9   :  { %3513 = vrcp.f32 %v1264_v0 }
0x16da   :  { %3515 = vtanh.f32 %v1258_v49 }
0x16e2   :  { %v3512_v6 = vpop.eup %3511 }
0x16e3   :  { %v3514_v9 = vpop.eup %3513  ;;  %1544 = vrot.lane.b32.xlu0 %v3512_v6, %s3760_s2 }
0x16e4   :  { %v3516_v11 = vpop.eup %3515 }
0x16e5   :  { %v1268_v13 = vsel %vm4042_vm5, %v3516_v11, %v3514_v9  ;;  %v1417_v11 = vadd.f32 %v4147_v22, %v4205_v50 }
0x16e6   :  { %v1269_v18 = vmul.f32 %v1268_v13, %v4159_v36 }
0x16e7   :  { %1271 = vrot.lane.b32.xlu0 %v1268_v13, %s3760_s2 }
0x1755   :  { %v1545_v14 = vpop.permute.xlu0 %1544 }
0x1756   :  { %v1547_v15 = vmul.f32 %v1545_v14, %v1530_v57 }
0x1758   :  { %1549 = vrot.lane.b32.xlu1 %v1547_v15, %s3761_s10 }
0x1759   :  { %v1272_v16 = vpop.permute.xlu0 %1271 }
0x175a   :  { %v1274_v63 = vmul.f32 %v1272_v16, %v1268_v13 }
0x175c   :  { %1276 = vrot.lane.b32.xlu0 %v1274_v63, %s3761_s10 }
0x17ca   :  { %v1550_v17 = vpop.permute.xlu1 %1549 }
0x17cb   :  { %1552 = vst.msk [vmem:[#allocation5] sm:$0xff] %vm279_vm2, %v1550_v17  ;;  %3174 = vmatmul.mubr.msk.f32.vlgmr.msra.gmra.mrb[18].mxu1 %vm279_vm2, %v1550_v17 }
0x17cc   :  { %3381 = vmatpush3.bf16.msra.mxu1 %v4169_v39  ;;  %3195 = vmatprep.mubr.msk.f32.mxu1 %vm3758_vm1, %v3759_v25 }
0x17cd   :  { %3382 = vmatprep.subr.bf16.mxu1 %v3757_v12 }
0x17ce   :  { %v1277_v19 = vpop.permute.xlu0 %1276 }
0x17cf   :  { %v1279_v21 = vadd.f32 %v1277_v19, %v1269_v18 }
0x17d0   :  { %3384 = vmatpush3.bf16.msra.mxu1 %v4179_v42 }
0x17d1   :  { %3517 = vtanh.f32 %v1279_v21  ;;  %3391 = vmatprep.subr.bf16.mxu1 %v3757_v12 }
0x17db   :  { %v3518_v26 = vpop.eup %3517 }
0x17dc   :  { %1282 = vrot.lane.b32.xlu0 %v3518_v26, %s3760_s2 }
0x184e   :  { %v1283_v27 = vpop.permute.xlu0 %1282 }
0x184f   :  { %v1285_v8 = vmul.f32 %v1283_v27, %v1268_v13 }
0x1851   :  { %1287 = vrot.lane.b32.xlu0 %v1285_v8, %s3761_s10 }
0x189e   :  { %v1622_v31 = vpop.f32.mrb[18].mxu1 }
0x189f   :  { %v1623_v32 = vadd.f32 %v1622_v31, %v1407_v30  ;;  %v3175_v33 = vpop.f32.mrb[19].mxu1 }
0x18a1   :  { %v2834_v34 = vmul.f32 -1.442695, %v1623_v32 }
0x18a3   :  { %3519 = vpow2.f32 %v2834_v34 }
0x18a4   :  { %3521 = vtanh.f32 %v1623_v32 }
0x18ad   :  { %v3520_v35 = vpop.eup %3519 }
0x18ae   :  { %v1629_v36 = vadd.f32 1.0, %v3520_v35  ;;  %v3522_v2 = vpop.eup %3521  ;;  %v1422_v35 = vadd.f32 %v4205_v50, %v4153_v29 }
0x18b0   :  { %3523 = vrcp.f32 %v1629_v36 }
0x18ba   :  { %v3524_v37 = vpop.eup %3523 }
0x18bb   :  { %v1633_v38 = vsel %vm4042_vm5, %v3522_v2, %v3524_v37 }
0x18bc   :  { %1636 = vrot.lane.b32.xlu1 %v1633_v38, %s3760_s2  ;;  %v1634_v46 = vmul.f32 %v1633_v38, %v1541_v5 }
0x18c3   :  { %v1288_v40 = vpop.permute.xlu0 %1287 }
0x18c4   :  { %1291 = vst.msk [vmem:[#allocation4 + $0x38] sm:$0xff] %vm279_vm2, %v1288_v40 }
0x18cb   :  { %v1299_v20 = vld [vmem:[#allocation4 + $0x38] sm:$0xff] }
0x18cc   :  { %3152 = vmatmul.mubr.msk.f32.gmra.mrb[22].mxu0 %vm279_vm2, %v1299_v20 }
0x18cd   :  { %3184 = vmatprep.mubr.msk.f32.mxu0 %vm3758_vm1, %v3759_v25 }
0x192e   :  { %v1637_v41 = vpop.permute.xlu1 %1636 }
0x192f   :  { %v1639_v43 = vmul.f32 %v1637_v41, %v1633_v38 }
0x1931   :  { %1641 = vrot.lane.b32.xlu1 %v1639_v43, %s3761_s10 }
0x199f   :  { %v4239_v44 = vpop.f32.mrb[22].mxu0 }
0x19a0   :  { %v4241_v45 = vpop.f32.mrb[23].mxu0 }
0x19a3   :  { %v1642_v47 = vpop.permute.xlu1 %1641 }
0x19a4   :  { %v1644_v48 = vadd.f32 %v1642_v47, %v1634_v46 }
0x19a6   :  { %3525 = vtanh.f32 %v1644_v48 }
0x19b0   :  { %v3526_v49 = vpop.eup %3525 }
0x19b1   :  { %1647 = vrot.lane.b32.xlu1 %v3526_v49, %s3760_s2 }
0x1a23   :  { %v1648_v10 = vpop.permute.xlu1 %1647 }
0x1a24   :  { %v1650_v51 = vmul.f32 %v1648_v10, %v1633_v38 }
0x1a26   :  { %1652 = vrot.lane.b32.xlu1 %v1650_v51, %s3761_s10 }
0x1a98   :  { %v1653_v24 = vpop.permute.xlu1 %1652 }
0x1a99   :  { %1656 = vst.msk [vmem:[#allocation5 + $0x8] sm:$0xff] %vm279_vm2, %v1653_v24  ;;  %3185 = vmatmul.mubr.msk.f32.vlgmr.msra.gmra.mrb[24].mxu0 %vm279_vm2, %v1653_v24 }
0x1a9a   :  { %3387 = vmatpush3.bf16.msra.mxu0 %v4169_v39  ;;  %3206 = vmatprep.mubr.msk.f32.mxu0 %vm3758_vm1, %v3759_v25 }
0x1a9b   :  { %3388 = vmatprep.subr.bf16.mxu0 %v3757_v12 }
0x1a9e   :  { %3390 = vmatpush3.bf16.msra.mxu0 %v4179_v42 }
0x1a9f   :  { %3397 = vmatprep.subr.bf16.mxu0 %v3757_v12 }
0x1b6c   :  { %v1726_v1 = vpop.f32.mrb[24].mxu0 }
0x1b6d   :  { %v1727_v54 = vadd.f32 %v1726_v1, %v1412_v52  ;;  %v3186_v55 = vpop.f32.mrb[25].mxu0 }
0x1b6f   :  { %v2836_v56 = vmul.f32 -1.442695, %v1727_v54 }
0x1b71   :  { %3527 = vpow2.f32 %v2836_v56 }
0x1b72   :  { %3529 = vtanh.f32 %v1727_v54  ;;  %v1427_v54 = vadd.f32 %v4151_v28, %v4205_v50 }
0x1b7b   :  { %v3528_v53 = vpop.eup %3527 }
0x1b7c   :  { %v1733_v7 = vadd.f32 1.0, %v3528_v53  ;;  %v3530_v57 = vpop.eup %3529 }
0x1b7e   :  { %3531 = vrcp.f32 %v1733_v7 }
0x1b88   :  { %v3532_v58 = vpop.eup %3531 }
0x1b89   :  { %v1737_v59 = vsel %vm4042_vm5, %v3530_v57, %v3532_v58 }
0x1b8a   :  { %1740 = vrot.lane.b32.xlu0 %v1737_v59, %s3760_s2  ;;  %v1738_v23 = vmul.f32 %v1737_v59, %v1644_v48 }
0x1bfc   :  { %v1741_v60 = vpop.permute.xlu0 %1740 }
0x1bfd   :  { %v1743_v61 = vmul.f32 %v1741_v60, %v1737_v59 }
0x1bff   :  { %1745 = vrot.lane.b32.xlu1 %v1743_v61, %s3761_s10 }
0x1c71   :  { %v1746_v62 = vpop.permute.xlu1 %1745 }
0x1c72   :  { %v1748_v0 = vadd.f32 %v1746_v62, %v1738_v23 }
0x1c74   :  { %3533 = vtanh.f32 %v1748_v0 }
0x1c7e   :  { %v3534_v4 = vpop.eup %3533 }
0x1c7f   :  { %1751 = vrot.lane.b32.xlu0 %v3534_v4, %s3760_s2  ;;  %v2290_v4 = vld [vmem:[%s4502_s9 + $0x8] sm:$0xff] }
0x1cf1   :  { %v1752_v5 = vpop.permute.xlu0 %1751 }
0x1cf2   :  { %v1754_v6 = vmul.f32 %v1752_v5, %v1737_v59 }
0x1cf4   :  { %1756 = vrot.lane.b32.xlu1 %v1754_v6, %s3761_s10 }
0x1d66   :  { %v1757_v9 = vpop.permute.xlu1 %1756 }
0x1d67   :  { %1760 = vst.msk [vmem:[#allocation5 + $0x10] sm:$0xff] %vm279_vm2, %v1757_v9  ;;  %3196 = vmatmul.mubr.msk.f32.vlgmr.msra.gmra.mrb[20].mxu1 %vm279_vm2, %v1757_v9 }
0x1d68   :  { %3393 = vmatpush3.bf16.msra.mxu1 %v4169_v39  ;;  %3217 = vmatprep.mubr.msk.f32.mxu1 %vm3758_vm1, %v3759_v25 }
0x1d69   :  { %3394 = vmatprep.subr.bf16.mxu1 %v3757_v12 }
0x1d6c   :  { %3396 = vmatpush3.bf16.msra.mxu1 %v4179_v42 }
0x1d6d   :  { %3403 = vmatprep.subr.bf16.mxu1 %v3757_v12 }
0x1e3a   :  { %v1830_v13 = vpop.f32.mrb[20].mxu1 }
0x1e3b   :  { %v1831_v14 = vadd.f32 %v1830_v13, %v1417_v11  ;;  %v3197_v15 = vpop.f32.mrb[21].mxu1  ;;  %v2291_v13 = vld [vmem:[%s4502_s9 + $0x10] sm:$0xff] }
0x1e3d   :  { %v2838_v16 = vmul.f32 -1.442695, %v1831_v14 }
0x1e3f   :  { %3535 = vpow2.f32 %v2838_v16 }
0x1e40   :  { %3537 = vtanh.f32 %v1831_v14  ;;  %v2292_v14 = vld [vmem:[%s4502_s9 + $0x18] sm:$0xff] }
0x1e41   :  { %v3413_v15 = vpack.c.bf16 %v2292_v14, %v2291_v13 }
0x1e49   :  { %v3536_v63 = vpop.eup %3535 }
0x1e4a   :  { %v1837_v17 = vadd.f32 1.0, %v3536_v63  ;;  %v3538_v18 = vpop.eup %3537  ;;  %v4324_v63 = vld [vmem:[#allocation5] sm:$0xff] }
0x1e4c   :  { %3539 = vrcp.f32 %v1837_v17  ;;  %v4329_v17 = vld [vmem:[#allocation5 + $0x8] sm:$0xff] }
0x1e56   :  { %v3540_v19 = vpop.eup %3539 }
0x1e57   :  { %v1841_v21 = vsel %vm4042_vm5, %v3538_v18, %v3540_v19  ;;  %v4333_v18 = vld [vmem:[#allocation5 + $0x10] sm:$0xff] }
0x1e58   :  { %1844 = vrot.lane.b32.xlu0 %v1841_v21, %s3760_s2  ;;  %v1842_v22 = vmul.f32 %v1841_v21, %v1748_v0  ;;  %v2289_v0 = vld [vmem:[%s4502_s9] sm:$0xff] }
0x1e59   :  { %v3409_v5 = vpack.c.bf16 %v2290_v4, %v2289_v0  ;;  %v1437_v4 = vadd.f32 %v4239_v44, %v4205_v50 }
0x1eca   :  { %v1845_v26 = vpop.permute.xlu0 %1844 }
0x1ecb   :  { %v1847_v27 = vmul.f32 %v1845_v26, %v1841_v21 }
0x1ecd   :  { %1849 = vrot.lane.b32.xlu1 %v1847_v27, %s3761_s10  ;;  %v1432_v27 = vadd.f32 %v4205_v50, %v4241_v45 }
0x1f3f   :  { %v1850_v8 = vpop.permute.xlu1 %1849 }
0x1f40   :  { %v1852_v30 = vadd.f32 %v1850_v8, %v1842_v22 }
0x1f42   :  { %3541 = vtanh.f32 %v1852_v30 }
0x1f4c   :  { %v3542_v31 = vpop.eup %3541 }
0x1f4d   :  { %1855 = vrot.lane.b32.xlu0 %v3542_v31, %s3760_s2 }
0x1fbf   :  { %v1856_v32 = vpop.permute.xlu0 %1855 }
0x1fc0   :  { %v1858_v33 = vmul.f32 %v1856_v32, %v1841_v21 }
0x1fc2   :  { %1860 = vrot.lane.b32.xlu1 %v1858_v33, %s3761_s10 }
0x2034   :  { %v1861_v34 = vpop.permute.xlu1 %1860 }
0x2035   :  { %1864 = vst.msk [vmem:[#allocation5 + $0x18] sm:$0xff] %vm279_vm2, %v1861_v34  ;;  %3207 = vmatmul.mubr.msk.f32.vlgmr.msra.gmra.mrb[26].mxu0 %vm279_vm2, %v1861_v34  ;;  %v4351_v34 = vld [vmem:[#allocation6] ss:$0 sm:$0xff] }
0x2036   :  { %3399 = vmatpush3.bf16.msra.mxu0 %v4169_v39  ;;  %3228 = vmatprep.mubr.msk.f32.mxu0 %vm3758_vm1, %v3759_v25 }
0x2037   :  { %3400 = vmatprep.subr.bf16.mxu0 %v3757_v12 }
0x203a   :  { %3402 = vmatpush3.bf16.msra.mxu0 %v4179_v42 }
0x203b   :  { %3410 = vmatprep.subr.bf16.mxu0 %v3409_v5 }
0x203c   :  { %v4337_v19 = vld [vmem:[#allocation5 + $0x18] sm:$0xff] }
0x2108   :  { %v1934_v36 = vpop.f32.mrb[26].mxu0 }
0x2109   :  { %v1935_v2 = vadd.f32 %v1934_v36, %v1422_v35  ;;  %v3208_v37 = vpop.f32.mrb[27].mxu0 }
0x210b   :  { %v2840_v38 = vmul.f32 -1.442695, %v1935_v2 }
0x210d   :  { %3543 = vpow2.f32 %v2840_v38 }
0x210e   :  { %3545 = vtanh.f32 %v1935_v2 }
0x2117   :  { %v3544_v40 = vpop.eup %3543 }
0x2118   :  { %v1941_v20 = vadd.f32 1.0, %v3544_v40  ;;  %v3546_v41 = vpop.eup %3545 }
0x211a   :  { %3547 = vrcp.f32 %v1941_v20 }
0x2124   :  { %v3548_v43 = vpop.eup %3547 }
0x2125   :  { %v1945_v46 = vsel %vm4042_vm5, %v3546_v41, %v3548_v43 }
0x2126   :  { %1948 = vrot.lane.b32.xlu0 %v1945_v46, %s3760_s2  ;;  %v1946_v29 = vmul.f32 %v1945_v46, %v1852_v30 }
0x2198   :  { %v1949_v47 = vpop.permute.xlu0 %1948 }
0x2199   :  { %v1951_v48 = vmul.f32 %v1949_v47, %v1945_v46 }
0x219b   :  { %1953 = vrot.lane.b32.xlu1 %v1951_v48, %s3761_s10 }
0x220d   :  { %v1954_v49 = vpop.permute.xlu1 %1953 }
0x220e   :  { %v1956_v10 = vadd.f32 %v1954_v49, %v1946_v29 }
0x2210   :  { %3549 = vtanh.f32 %v1956_v10 }
0x221a   :  { %v3550_v51 = vpop.eup %3549 }
0x221b   :  { %1959 = vrot.lane.b32.xlu0 %v3550_v51, %s3760_s2 }
0x228d   :  { %v1960_v24 = vpop.permute.xlu0 %1959 }
0x228e   :  { %v1962_v52 = vmul.f32 %v1960_v24, %v1945_v46 }
0x2290   :  { %1964 = vrot.lane.b32.xlu1 %v1962_v52, %s3761_s10 }
0x2302   :  { %v1965_v1 = vpop.permute.xlu1 %1964 }
0x2303   :  { %1968 = vst.msk [vmem:[#allocation5 + $0x20] sm:$0xff] %vm279_vm2, %v1965_v1  ;;  %3218 = vmatmul.mubr.msk.f32.vlgmr.msra.gmra.mrb[22].mxu1 %vm279_vm2, %v1965_v1 }
0x2304   :  { %3405 = vmatpush3.bf16.msra.mxu1 %v4169_v39  ;;  %3239 = vmatprep.mubr.msk.f32.mxu1 %vm3758_vm1, %v3759_v25 }
0x2305   :  { %3406 = vmatprep.subr.bf16.mxu1 %v3757_v12 }
0x2308   :  { %3408 = vmatpush3.bf16.msra.mxu1 %v4179_v42 }
0x230a   :  { %v4341_v21 = vld [vmem:[#allocation5 + $0x20] sm:$0xff] }
0x23d6   :  { %v2038_v55 = vpop.f32.mrb[22].mxu1 }
0x23d7   :  { %v2039_v56 = vadd.f32 %v2038_v55, %v1427_v54  ;;  %v3219_v53 = vpop.f32.mrb[23].mxu1 }
0x23d9   :  { %v2842_v7 = vmul.f32 -1.442695, %v2039_v56 }
0x23db   :  { %3551 = vpow2.f32 %v2842_v7 }
0x23dc   :  { %3553 = vtanh.f32 %v2039_v56 }
0x23e5   :  { %v3552_v57 = vpop.eup %3551 }
0x23e6   :  { %v2045_v58 = vadd.f32 1.0, %v3552_v57  ;;  %v3554_v39 = vpop.eup %3553  ;;  %v2493_v57 = vld [vmem:[#allocation15] sm:$0xff] }
0x23e8   :  { %3555 = vrcp.f32 %v2045_v58  ;;  %v2494_v58 = vld [vmem:[#allocation15 + $0x8] sm:$0xff] }
0x23f2   :  { %v3556_v59 = vpop.eup %3555 }
0x23f3   :  { %v2049_v60 = vsel %vm4042_vm5, %v3554_v39, %v3556_v59  ;;  %v3417_v39 = vpack.c.bf16 %v2494_v58, %v2493_v57 }
0x23f4   :  { %2052 = vrot.lane.b32.xlu0 %v2049_v60, %s3760_s2  ;;  %v2050_v28 = vmul.f32 %v2049_v60, %v1956_v10 }
0x23f5   :  { %3418 = vmatprep.subr.bf16.mxu1 %v3417_v39 }
0x2466   :  { %v2053_v42 = vpop.permute.xlu0 %2052 }
0x2467   :  { %v2055_v61 = vmul.f32 %v2053_v42, %v2049_v60 }
0x2469   :  { %2057 = vrot.lane.b32.xlu1 %v2055_v61, %s3761_s10  ;;  %v2495_v61 = vld [vmem:[#allocation15 + $0x10] sm:$0xff] }
0x24db   :  { %v2058_v23 = vpop.permute.xlu1 %2057 }
0x24dc   :  { %v4305_v62 = vadd.f32 %v2058_v23, %v2050_v28  ;;  %v2496_v28 = vld [vmem:[#allocation15 + $0x18] sm:$0xff] }
0x24dd   :  { %v3421_v23 = vpack.c.bf16 %v2496_v28, %v2495_v61 }
0x24de   :  { %3557 = vtanh.f32 %v4305_v62 }
0x24e8   :  { %v3558_v6 = vpop.eup %3557 }
0x24e9   :  { %2063 = vrot.lane.b32.xlu0 %v3558_v6, %s3760_s2 }
0x255b   :  { %v2064_v9 = vpop.permute.xlu0 %2063 }
0x255c   :  { %v2066_v11 = vmul.f32 %v2064_v9, %v2049_v60 }
0x255e   :  { %2068 = vrot.lane.b32.xlu1 %v2066_v11, %s3761_s10 }
0x25d0   :  { %v2069_v16 = vpop.permute.xlu1 %2068 }
0x25d1   :  { %2072 = vst.msk [vmem:[#allocation5 + $0x28] sm:$0xff] %vm279_vm2, %v2069_v16  ;;  %3229 = vmatmul.mubr.msk.f32.vlgmr.msra.gmra.mrb[28].mxu0 %vm279_vm2, %v2069_v16 }
0x25d2   :  { %3412 = vmatpush3.bf16.msra.mxu0 %v3409_v5  ;;  %3250 = vmatprep.mubr.msk.f32.mxu0 %vm279_vm2, %v4324_v63 }
0x25d3   :  { %3414 = vmatprep.subr.bf16.mxu0 %v3413_v15 }
0x25d6   :  { %3416 = vmatpush3.bf16.msra.mxu0 %v3413_v15 }
0x25d7   :  { %3425 = vmatprep.subr.bf16.mxu0 %v3757_v12 }
0x25d8   :  { %v4345_v26 = vld [vmem:[#allocation5 + $0x28] sm:$0xff] }
0x25d9   :  { %3251 = vmatmul.mubr.msk.f32.vlgmr.msra.gmra.mrb[30].mxu0 %vm279_vm2, %v4329_v17 }
0x25da   :  { %3253 = vmatprep.mubr.msk.f32.mxu0 %vm279_vm2, %v4333_v18 }
0x25dd   :  { %3254 = vmatmul.mubr.msk.f32.gmra.mrb[32].mxu0 %vm279_vm2, %v4337_v19 }
0x25de   :  { %3256 = vmatprep.mubr.msk.f32.mxu0 %vm279_vm2, %v4341_v21 }
0x25e1   :  { %3257 = vmatmul.mubr.msk.f32.gmra.mrb[34].mxu0 %vm279_vm2, %v4345_v26 }
0x26a4   :  { %v2142_v22 = vpop.f32.mrb[28].mxu0 }
0x26a5   :  { %v2143_v8 = vadd.f32 %v2142_v22, %v1432_v27  ;;  %v3230_v30 = vpop.f32.mrb[29].mxu0 }
0x26a7   :  { %v2844_v31 = vmul.f32 -1.442695, %v2143_v8 }
0x26a9   :  { %3559 = vpow2.f32 %v2844_v31 }
0x26aa   :  { %3561 = vtanh.f32 %v2143_v8 }
0x26ac   :  { %v3252_v32 = vpop.f32.mrb[30].mxu0 }
0x26ad   :  { %v2390_v33 = vpop.f32.mrb[31].mxu0  ;;  %v4358_v37 = vadd.f32 %v3252_v32, %v4351_v34 }
0x26ae   :  { %v4361_v45 = vadd.f32 %v4351_v34, %v2390_v33 }
0x26af   :  { %v2431_v46 = vsel %vm2429_vm6, %v4358_v37, -inf }
0x26b0   :  { %v4353_v35 = vpop.f32.mrb[32].mxu0  ;;  %v2430_v48 = vsel %vm2429_vm6, %v4361_v45, -inf }
0x26b1   :  { %v4355_v36 = vpop.f32.mrb[33].mxu0 }
0x26b3   :  { %v3560_v2 = vpop.eup %3559 }
0x26b4   :  { %v2149_v38 = vadd.f32 1.0, %v3560_v2  ;;  %v3258_v40 = vpop.f32.mrb[34].mxu0  ;;  %v3562_v24 = vpop.eup %3561 }
0x26b5   :  { %v4364_v20 = vadd.f32 %v3258_v40, %v4351_v34  ;;  %v2410_v41 = vpop.f32.mrb[35].mxu0  ;;  %v2406_v40 = vadd.f32 %v4353_v35, %v4351_v34 }
0x26b6   :  { %3563 = vrcp.f32 %v2149_v38  ;;  %v4367_v43 = vadd.f32 %v4351_v34, %v2410_v41  ;;  %v3762_v38 = vmov 0   ;;  %v2401_v41 = vadd.f32 %v4351_v34, %v4355_v36 }
0x26b7   :  { %v2436_v47 = vsel %vm2429_vm6, %v4364_v20, -inf  ;;  %3446 = vset.pattern.permute.xlu1 %v3762_v38  ;;  %3445 = vset.pattern.permute.xlu0 %v3762_v38 }
0x26b8   :  { %v2437_v29 = vmax.f32 %v2431_v46, %v2436_v47  ;;  %v2434_v49 = vsel %vm2429_vm6, %v4367_v43, -inf }
0x26b9   :  { %v2435_v10 = vmax.f32 %v2430_v48, %v2434_v49 }
0x26bb   :  { %v4377_v51 = vmax.f32 %v2435_v10, %v2437_v29 }
0x26c0   :  { %v3564_v52 = vpop.eup %3563 }
0x26c1   :  { %v2153_v1 = vsel %vm4042_vm5, %v3562_v24, %v3564_v52  ;;  %v2432_v52 = vsel %vm2429_vm6, %v2401_v41, -inf }
0x26c2   :  { %2156 = vrot.lane.b32.xlu0 %v2153_v1, %s3760_s2  ;;  %v2154_v56 = vmul.f32 %v2153_v1, %v4305_v62 }
0x2734   :  { %v2157_v54 = vpop.permute.xlu0 %2156 }
0x2735   :  { %v2159_v55 = vmul.f32 %v2157_v54, %v2153_v1 }
0x2737   :  { %2161 = vrot.lane.b32.xlu1 %v2159_v55, %s3761_s10 }
0x27a9   :  { %v2162_v53 = vpop.permute.xlu1 %2161 }
0x27aa   :  { %v2164_v7 = vadd.f32 %v2162_v53, %v2154_v56 }
0x27ac   :  { %3565 = vtanh.f32 %v2164_v7 }
0x27b6   :  { %v3566_v59 = vpop.eup %3565 }
0x27b7   :  { %2167 = vrot.lane.b32.xlu0 %v3566_v59, %s3760_s2 }
0x2829   :  { %v2168_v60 = vpop.permute.xlu0 %2167 }
0x282a   :  { %v2170_v42 = vmul.f32 %v2168_v60, %v2153_v1 }
0x282c   :  { %2172 = vrot.lane.b32.xlu1 %v2170_v42, %s3761_s10 }
0x289e   :  { %v2173_v0 = vpop.permute.xlu1 %2172 }
0x289f   :  { %2176 = vst.msk [vmem:[#allocation5 + $0x30] sm:$0xff] %vm279_vm2, %v2173_v0  ;;  %3240 = vmatmul.mubr.msk.f32.vlgmr.msra.gmra.mrb[24].mxu1 %vm279_vm2, %v2173_v0 }
0x28a0   :  { %3420 = vmatpush3.bf16.msra.mxu1 %v3417_v39  ;;  %3270 = vmatprep.mubr.msk.f32.mxu1 %vm279_vm2, %v4324_v63 }
0x28a1   :  { %3422 = vmatprep.subr.bf16.mxu1 %v3421_v23 }
0x28a4   :  { %3424 = vmatpush3.bf16.msra.mxu1 %v3421_v23 }
0x28a6   :  { %v2287_v62 = vld [vmem:[#allocation5 + $0x30] sm:$0xff] }
0x28a7   :  { %3271 = vmatmul.mubr.msk.f32.vlgmr.msra.gmra.mrb[26].mxu1 %vm279_vm2, %v4329_v17  ;;  %3259 = vmatprep.mubr.msk.f32.mxu0 %vm279_vm2, %v2287_v62 }
0x28a8   :  { %3273 = vmatprep.mubr.msk.f32.mxu1 %vm279_vm2, %v4333_v18 }
0x28ab   :  { %3274 = vmatmul.mubr.msk.f32.gmra.mrb[28].mxu1 %vm279_vm2, %v4337_v19 }
0x28ac   :  { %3276 = vmatprep.mubr.msk.f32.mxu1 %vm279_vm2, %v4341_v21 }
0x28af   :  { %3277 = vmatmul.mubr.msk.f32.gmra.mrb[30].mxu1 %vm279_vm2, %v4345_v26 }
0x28b0   :  { %3279 = vmatprep.mubr.msk.f32.mxu1 %vm279_vm2, %v2287_v62 }
0x2972   :  { %v2246_v5 = vpop.f32.mrb[24].mxu1 }
0x2973   :  { %v2247_v6 = vadd.f32 %v2246_v5, %v1437_v4  ;;  %v3241_v9 = vpop.f32.mrb[25].mxu1 }
0x2975   :  { %v2846_v11 = vmul.f32 -1.442695, %v2247_v6 }
0x2977   :  { %3567 = vpow2.f32 %v2846_v11 }
0x2978   :  { %3569 = vtanh.f32 %v2247_v6 }
0x297a   :  { %v4404_v13 = vpop.f32.mrb[26].mxu1 }
0x297b   :  { %v4406_v14 = vpop.f32.mrb[27].mxu1 }
0x297e   :  { %v4408_v15 = vpop.f32.mrb[28].mxu1 }
0x297f   :  { %v4410_v16 = vpop.f32.mrb[29].mxu1 }
0x2981   :  { %v3568_v63 = vpop.eup %3567 }
0x2982   :  { %v2253_v17 = vadd.f32 1.0, %v3568_v63  ;;  %v4412_v18 = vpop.f32.mrb[30].mxu1  ;;  %v3570_v50 = vpop.eup %3569 }
0x2983   :  { %v4414_v19 = vpop.f32.mrb[31].mxu1 }
0x2984   :  { %3571 = vrcp.f32 %v2253_v17 }
0x298e   :  { %v3572_v44 = vpop.eup %3571 }
0x298f   :  { %v2257_v21 = vsel %vm4042_vm5, %v3570_v50, %v3572_v44 }
0x2990   :  { %2260 = vrot.lane.b32.xlu0 %v2257_v21, %s3760_s2  ;;  %v2258_v22 = vmul.f32 %v2257_v21, %v2164_v7 }
0x2a02   :  { %v2261_v26 = vpop.permute.xlu0 %2260 }
0x2a03   :  { %v2263_v27 = vmul.f32 %v2261_v26, %v2257_v21 }
0x2a05   :  { %2265 = vrot.lane.b32.xlu1 %v2263_v27, %s3761_s10 }
0x2a77   :  { %v2266_v8 = vpop.permute.xlu1 %2265 }
0x2a78   :  { %v2268_v30 = vadd.f32 %v2266_v8, %v2258_v22 }
0x2a7a   :  { %3573 = vtanh.f32 %v2268_v30 }
0x2a84   :  { %v3574_v31 = vpop.eup %3573 }
0x2a85   :  { %2271 = vrot.lane.b32.xlu0 %v3574_v31, %s3760_s2 }
0x2af7   :  { %v2272_v32 = vpop.permute.xlu0 %2271 }
0x2af8   :  { %v2274_v33 = vmul.f32 %v2272_v32, %v2257_v21 }
0x2afa   :  { %2276 = vrot.lane.b32.xlu1 %v2274_v33, %s3761_s10 }
0x2b6c   :  { %v2277_v2 = vpop.permute.xlu1 %2276 }
0x2b6d   :  { %2280 = vst.msk [vmem:[#allocation5 + $0x38] sm:$0xff] %vm279_vm2, %v2277_v2 }
0x2b74   :  { %v2288_v3 = vld [vmem:[#allocation5 + $0x38] sm:$0xff] }
0x2b75   :  { %3260 = vmatmul.mubr.msk.f32.gmra.mrb[36].mxu0 %vm279_vm2, %v2288_v3  ;;  %3280 = vmatmul.mubr.msk.f32.gmra.mrb[32].mxu1 %vm279_vm2, %v2288_v3 }
0x2b76   :  { %3290 = vmatprep.mubr.msk.f32.mxu0 %vm3758_vm1, %v3759_v25  ;;  %v2433_v25 = vsel %vm2429_vm6, %v2406_v40, -inf }
0x2c48   :  { %v3261_v46 = vpop.f32.mrb[36].mxu0  ;;  %v4431_v47 = vpop.f32.mrb[32].mxu1 }
0x2c49   :  { %v2426_v48 = vadd.f32 %v3261_v46, %v4351_v34  ;;  %v2420_v29 = vpop.f32.mrb[37].mxu0  ;;  %v4434_v49 = vpop.f32.mrb[33].mxu1 }
0x2c4a   :  { %v2421_v10 = vadd.f32 %v4351_v34, %v2420_v29 }
0x2c4b   :  { %v2440_v24 = vsel %vm2429_vm6, %v2426_v48, -inf }
0x2c4c   :  { %v2441_v35 = vmax.f32 %v2433_v25, %v2440_v24  ;;  %v2438_v1 = vsel %vm2429_vm6, %v2421_v10, -inf  ;;  %v2696_v24 = vld [vmem:[%s4506_s13] sm:$0xff] }
0x2c4d   :  { %v2439_v36 = vmax.f32 %v2432_v52, %v2438_v1  ;;  %v2697_v52 = vld [vmem:[%s4506_s13 + $0x8] sm:$0xff]  ;;  %v2698_v1 = vld [vmem:[%s4506_s13 + $0x10] sm:$0xff] }
0x2c4f   :  { %v2443_v54 = vmax.f32 %v2439_v36, %v2441_v35  ;;  %v3426_v35 = vpack.c.bf16 %v2697_v52, %v2696_v24  ;;  %v2699_v36 = vld [vmem:[%s4506_s13 + $0x18] sm:$0xff] }
0x2c51   :  { %v2444_v55 = vmax.f32 %v4377_v51, %v2443_v54  ;;  %3427 = vmatpush3.bf16.msra.mxu0 %v3426_v35  ;;  %v3429_v54 = vpack.c.bf16 %v2699_v36, %v2698_v1 }
0x2c52   :  { %3428 = vmatprep.subr.bf16.mxu0 %v3757_v12 }
0x2c53   :  { %v2445_v56 = vsub.f32 %v4361_v45, %v2444_v55  ;;  %v2447_v53 = vsub.f32 %v2401_v41, %v2444_v55  ;;  %v2448_v7 = vsub.f32 %v2406_v40, %v2444_v55  ;;  %v2449_v57 = vsub.f32 %v4367_v43, %v2444_v55 }
0x2c54   :  { %v2450_v34 = vsub.f32 %v4364_v20, %v2444_v55  ;;  %v2451_v58 = vsub.f32 %v2421_v10, %v2444_v55  ;;  %v2452_v39 = vsub.f32 %v2426_v48, %v2444_v55  ;;  %v2446_v59 = vsub.f32 %v4358_v37, %v2444_v55  ;;  %v2856_v55 = vld [vmem:[%s4505_s12] ss:$0 sm:$0xff] }
0x2c55   :  { %v2457_v60 = vmul.f32 1.442695, %v2447_v53  ;;  %v2453_v42 = vmul.f32 1.442695, %v2445_v56  ;;  %v2459_v28 = vmul.f32 1.442695, %v2448_v7  ;;  %3430 = vmatpush3.bf16.msra.mxu0 %v3429_v54  ;;  %v2576_v12 = vadd.f32 %v4404_v13, %v2856_v55 }
0x2c56   :  { %v2455_v61 = vmul.f32 1.442695, %v2446_v59  ;;  %v2461_v23 = vmul.f32 1.442695, %v2449_v57  ;;  %v2463_v45 = vmul.f32 1.442695, %v2450_v34  ;;  %v2571_v56 = vadd.f32 %v2856_v55, %v4406_v14 }
0x2c57   :  { %3575 = vpow2.f32 %v2457_v60  ;;  %v2465_v51 = vmul.f32 1.442695, %v2451_v58  ;;  %v2467_v43 = vmul.f32 1.442695, %v2452_v39  ;;  %v2586_v53 = vadd.f32 %v4408_v15, %v2856_v55  ;;  %v2618_v15 = vld [vmem:[#allocation2 + $0x8] sm:$0xff]  ;;  %v2617_v59 = vld [vmem:[#allocation2] sm:$0xff] }
0x2c58   :  { %3577 = vpow2.f32 %v2453_v42  ;;  %v2581_v7 = vadd.f32 %v2856_v55, %v4410_v16  ;;  %v2596_v57 = vadd.f32 %v4412_v18, %v2856_v55  ;;  %v2591_v34 = vadd.f32 %v2856_v55, %v4414_v19 }
0x2c59   :  { %3579 = vpow2.f32 %v2455_v61  ;;  %v2606_v58 = vadd.f32 %v4431_v47, %v2856_v55  ;;  %v2601_v13 = vadd.f32 %v2856_v55, %v4434_v49  ;;  %v2865_v55 = vld [vmem:[%s4507_s14] ss:$0 sm:$0xff] }
0x2c5a   :  { %3581 = vpow2.f32 %v2459_v28 }
0x2c5b   :  { %3583 = vpow2.f32 %v2461_v23 }
0x2c5c   :  { %3585 = vpow2.f32 %v2463_v45  ;;  %v2619_v45 = vld [vmem:[#allocation2 + $0x10] sm:$0xff] }
0x2c5d   :  { %3587 = vpow2.f32 %v2465_v51  ;;  %v2620_v51 = vld [vmem:[#allocation2 + $0x18] sm:$0xff] }
0x2c5e   :  { %3589 = vpow2.f32 %v2467_v43 }
0x2c61   :  { %v3576_v0 = vpop.eup %3575 }
0x2c62   :  { %v3578_v20 = vpop.eup %3577  ;;  %v2472_v9 = vsel %vm2429_vm6, %v3576_v0, 0.0 }
0x2c63   :  { %v3580_v62 = vpop.eup %3579  ;;  %v2469_v37 = vsel %vm2429_vm6, %v3578_v20, 0.0 }
0x2c64   :  { %v2470_v4 = vsel %vm2429_vm6, %v3580_v62, 0.0  ;;  %v3582_v5 = vpop.eup %3581 }
0x2c65   :  { %v2471_v6 = vadd.f32 %v2470_v4, %v2469_v37  ;;  %v3584_v11 = vpop.eup %3583  ;;  %v2474_v17 = vsel %vm2429_vm6, %v3582_v5, 0.0 }
0x2c66   :  { %v3586_v50 = vpop.eup %3585  ;;  %v2476_v21 = vsel %vm2429_vm6, %v3584_v11, 0.0 }
0x2c67   :  { %v2473_v63 = vadd.f32 %v2472_v9, %v2471_v6  ;;  %v3588_v26 = vpop.eup %3587  ;;  %v2478_v22 = vsel %vm2429_vm6, %v3586_v50, 0.0 }
0x2c68   :  { %v3590_v8 = vpop.eup %3589  ;;  %v2480_v31 = vsel %vm2429_vm6, %v3588_v26, 0.0 }
0x2c69   :  { %v2475_v44 = vadd.f32 %v2474_v17, %v2473_v63  ;;  %v2482_v33 = vsel %vm2429_vm6, %v3590_v8, 0.0  ;;  %v2622_v63 = vld [vmem:[#allocation2 + $0x28] sm:$0xff] }
0x2c6b   :  { %v2477_v27 = vadd.f32 %v2476_v21, %v2475_v44 }
0x2c6d   :  { %v2479_v30 = vadd.f32 %v2478_v22, %v2477_v27 }
0x2c6f   :  { %v2481_v32 = vadd.f32 %v2480_v31, %v2479_v30 }
0x2c71   :  { %v2483_v2 = vadd.f32 %v2482_v33, %v2481_v32 }
0x2c73   :  { %3591 = vrcp.f32 %v2483_v2  ;;  %v2623_v2 = vld [vmem:[#allocation2 + $0x30] sm:$0xff] }
0x2c74   :  { %3593 = vtanh.f32 %v2576_v12 }
0x2c75   :  { %3595 = vtanh.f32 %v2571_v56 }
0x2c76   :  { %3597 = vtanh.f32 %v2586_v53 }
0x2c77   :  { %3599 = vtanh.f32 %v2581_v7 }
0x2c78   :  { %3601 = vtanh.f32 %v2596_v57 }
0x2c79   :  { %3603 = vtanh.f32 %v2591_v34 }
0x2c7a   :  { %3605 = vtanh.f32 %v2606_v58 }
0x2c7b   :  { %3607 = vtanh.f32 %v2601_v13 }
0x2c7d   :  { %v3592_v3 = vpop.eup %3591 }
0x2c7e   :  { %v2486_v38 = vmul.f32 %v3592_v3, %v3580_v62  ;;  %v2485_v40 = vmul.f32 %v3592_v3, %v3578_v20  ;;  %v2487_v41 = vmul.f32 %v3592_v3, %v3576_v0  ;;  %v2488_v46 = vmul.f32 %v3592_v3, %v3582_v5  ;;  %v3594_v39 = vpop.eup %3593 }
0x2c7f   :  { %v2489_v48 = vmul.f32 %v3592_v3, %v3584_v11  ;;  %v2490_v29 = vmul.f32 %v3592_v3, %v3586_v50  ;;  %v2491_v10 = vmul.f32 %v3592_v3, %v3588_v26  ;;  %v2492_v25 = vmul.f32 %v3592_v3, %v3590_v8  ;;  %v3596_v14 = vpop.eup %3595  ;;  %v2621_v11 = vld [vmem:[#allocation2 + $0x20] sm:$0xff]  ;;  %v2624_v3 = vld [vmem:[#allocation2 + $0x38] sm:$0xff] }
0x2c80   :  { %2640 = vperm.xlu1 %3446, %v2486_v38   ;;  %2635 = vperm.xlu0 %3445, %v2485_v40   ;;  %v3598_v60 = vpop.eup %3597  ;;  %v2626_v16 = vmul.f32 %v3594_v39, %v2618_v15  ;;  %v2625_v42 = vmul.f32 %v3596_v14, %v2617_v59 }
0x2c81   :  { %v3600_v61 = vpop.eup %3599  ;;  %v2628_v20 = vmul.f32 %v3598_v60, %v2620_v51 }
0x2c82   :  { %v3602_v47 = vpop.eup %3601  ;;  %v2627_v0 = vmul.f32 %v3600_v61, %v2619_v45 }
0x2c83   :  { %v3604_v62 = vpop.eup %3603  ;;  %v2630_v21 = vmul.f32 %v3602_v47, %v2622_v63 }
0x2c84   :  { %2645 = vperm.xlu1 %3446, %v2487_v41   ;;  %2650 = vperm.xlu0 %3445, %v2488_v46   ;;  %v3606_v17 = vpop.eup %3605  ;;  %v2629_v44 = vmul.f32 %v3604_v62, %v2621_v11 }
0x2c85   :  { %v3608_v26 = vpop.eup %3607  ;;  %v2632_v41 = vmul.f32 %v3606_v17, %v2624_v3 }
0x2c86   :  { %v2631_v40 = vmul.f32 %v3608_v26, %v2623_v2 }
0x2c88   :  { %2655 = vperm.xlu1 %3446, %v2489_v48   ;;  %2660 = vperm.xlu0 %3445, %v2490_v29  }
0x2c8c   :  { %2665 = vperm.xlu1 %3446, %v2491_v10   ;;  %2670 = vperm.xlu0 %3445, %v2492_v25  }
0x2cff   :  { %v2641_v18 = vpop.permute.xlu1 %2640  ;;  %v2636_v28 = vpop.permute.xlu0 %2635 }
0x2d00   :  { %v2674_v23 = vmul.f32 %v2641_v18, %v2626_v16  ;;  %v2673_v19 = vmul.f32 %v2636_v28, %v2625_v42 }
0x2d02   :  { %v2682_v43 = vsel %vm279_vm2, %v2674_v23, 0.0  ;;  %v2681_v49 = vsel %vm279_vm2, %v2673_v19, 0.0 }
0x2d03   :  { %v2683_v37 = vadd.f32 %v2682_v43, %v2681_v49  ;;  %v2646_v4 = vpop.permute.xlu1 %2645  ;;  %v2651_v5 = vpop.permute.xlu0 %2650 }
0x2d04   :  { %v2675_v6 = vmul.f32 %v2646_v4, %v2627_v0  ;;  %v2676_v9 = vmul.f32 %v2651_v5, %v2628_v20 }
0x2d06   :  { %v2684_v50 = vsel %vm279_vm2, %v2675_v6, 0.0  ;;  %v2686_v30 = vsel %vm279_vm2, %v2676_v9, 0.0 }
0x2d07   :  { %v2685_v27 = vadd.f32 %v2684_v50, %v2683_v37  ;;  %v2656_v22 = vpop.permute.xlu1 %2655  ;;  %v2661_v8 = vpop.permute.xlu0 %2660 }
0x2d08   :  { %v2677_v31 = vmul.f32 %v2656_v22, %v2629_v44  ;;  %v2678_v32 = vmul.f32 %v2661_v8, %v2630_v21 }
0x2d09   :  { %v2687_v33 = vadd.f32 %v2686_v30, %v2685_v27 }
0x2d0a   :  { %v2688_v38 = vsel %vm279_vm2, %v2677_v31, 0.0  ;;  %v2690_v10 = vsel %vm279_vm2, %v2678_v32, 0.0 }
0x2d0b   :  { %v2689_v46 = vadd.f32 %v2688_v38, %v2687_v33  ;;  %v2666_v48 = vpop.permute.xlu1 %2665  ;;  %v2671_v29 = vpop.permute.xlu0 %2670 }
0x2d0c   :  { %v2679_v25 = vmul.f32 %v2666_v48, %v2631_v40  ;;  %v2680_v24 = vmul.f32 %v2671_v29, %v2632_v41 }
0x2d0d   :  { %v2691_v52 = vadd.f32 %v2690_v10, %v2689_v46 }
0x2d0e   :  { %v2692_v35 = vsel %vm279_vm2, %v2679_v25, 0.0  ;;  %v2694_v36 = vsel %vm279_vm2, %v2680_v24, 0.0 }
0x2d0f   :  { %v2693_v1 = vadd.f32 %v2692_v35, %v2691_v52 }
0x2d11   :  { %v2695_v54 = vadd.f32 %v2694_v36, %v2693_v1 }
0x2d13   :  { %3291 = vmatmul.mubr.msk.f32.vlgmr.msra.gmra.mrb[38].mxu0 %vm279_vm2, %v2695_v54 }
0x2de6   :  { %v2776_v12 = vpop.f32.mrb[38].mxu0 }
0x2de7   :  { %v2777_v56 = vadd.f32 %v2865_v55, %v2776_v12  ;;  %v3292_v53 = vpop.f32.mrb[39].mxu0 }
0x2de9   :  { %2781 = vst.msk [vmem:[%s4508_s15] sm:$0xff] %vm2780_vm7, %v2777_v56 }
0x2dea   :  { %2786 = vsyncpa [#allocation8], 1 }
0x2deb   :  { %2787 = vsyncpa [#allocation10], 1 }
0x2dec   :  { %2788 = vsyncpa [#allocation13], 1 }
0x2ded   :  { %2789 = vsyncpa [#allocation16], 1 }

</bundles_post_ra>
